<compile_context>
chip_gen: v7x
topology: tpu7x:2x2x1
jax: 0.10.0
libtpu: 0.0.40
codegen_flags: <defaults>
</compile_context>

<pallas_src>
import functools
import math

import jax
import jax.numpy as jnp
from jax.experimental import pallas as pl
from jax.experimental.pallas import tpu as pltpu

LANE = 128                       # pad feature dims to the TPU lane width
_VMEM_LIMIT = 48 * 1024 * 1024   # safe even on v7x (64 MiB physical per TC)
_SMALL_PATH_MAX_N = 1024         # single-kernel path when n_pad <= this


def _round_up(v, m):
    return ((v + m - 1) // m) * m


# ---------------------------------------------------------------------------
# Small-graph fast path: whole forward (3 GCN layers + fc) in ONE pallas_call.
# Everything (A_hat, X, all weights/biases, activations) stays VMEM-resident.
# ---------------------------------------------------------------------------
def _fused_small_kernel(a_ref, x_ref, w1_ref, b1_ref, w2_ref, b2_ref,
                        w3_ref, b3_ref, wfc_ref, bfc_ref, o_ref):
    cd = x_ref.dtype
    a = a_ref[...]
    h = x_ref[...]
    for w_ref, b_ref in ((w1_ref, b1_ref), (w2_ref, b2_ref), (w3_ref, b3_ref)):
        agg = jnp.dot(a, h, preferred_element_type=jnp.float32).astype(cd)
        h = jnp.maximum(
            jnp.dot(agg, w_ref[...], preferred_element_type=jnp.float32)
            + b_ref[...], 0.0).astype(cd)
        # dropout(p=0.5, training=False) -> identity
    o_ref[...] = (jnp.dot(h, wfc_ref[...], preferred_element_type=jnp.float32)
                  + bfc_ref[...]).astype(o_ref.dtype)


def _fused_small_forward(a_p, x_p, layer_wb, wfc_p, bfc_p, *, out_dtype):
    n_pad = a_p.shape[0]
    c_out = wfc_p.shape[1]
    args = [a_p, x_p]
    for w, b in layer_wb:
        args.extend((w, b))
    args.extend((wfc_p, bfc_p))

    flops = 0
    c_prev = x_p.shape[1]
    for w, _ in layer_wb:
        flops += 2 * n_pad * n_pad * c_prev          # A_hat @ H
        flops += 2 * n_pad * c_prev * w.shape[1]     # (.) @ W
        c_prev = w.shape[1]
    flops += 2 * n_pad * c_prev * c_out              # fc
    bytes_accessed = (sum(a.size * a.dtype.itemsize for a in args)
                      + n_pad * c_out * jnp.dtype(out_dtype).itemsize)

    return pl.pallas_call(
        _fused_small_kernel,
        out_shape=jax.ShapeDtypeStruct((n_pad, c_out), out_dtype),
        grid=(1,),
        in_specs=[pl.BlockSpec(a.shape, lambda i: (0, 0)) for a in args],
        out_specs=pl.BlockSpec((n_pad, c_out), lambda i: (0, 0)),
        compiler_params=pltpu.CompilerParams(
            dimension_semantics=("arbitrary",),
            vmem_limit_bytes=_VMEM_LIMIT,
        ),
        cost_estimate=pl.CostEstimate(flops=int(flops), transcendentals=0,
                                      bytes_accessed=int(bytes_accessed)),
    )(*args)


# ---------------------------------------------------------------------------
# Tiled path: one fused pallas_call per GCN layer.
#   grid = (row tiles i [parallel], reduction tiles k [arbitrary])
#   A_hat tiles streamed; H / W / b (and Wfc / bfc) VMEM-resident.
# ---------------------------------------------------------------------------
def _gcn_accumulate(a_ref, h_ref, acc_ref, tk):
    """acc (f32) accumulates A_tile @ H_tile; direct store at k == 0."""
    k = pl.program_id(1)
    start = pl.multiple_of(k * tk, tk)
    h_tile = h_ref[pl.ds(start, tk), :]
    prod = jnp.dot(a_ref[...], h_tile, preferred_element_type=jnp.float32)

    @pl.when(k == 0)
    def _():
        acc_ref[...] = prod

    @pl.when(k != 0)
    def _():
        acc_ref[...] += prod


def _gcn_layer_kernel(a_ref, h_ref, w_ref, b_ref, o_ref, acc_ref, *, tk):
    _gcn_accumulate(a_ref, h_ref, acc_ref, tk)

    @pl.when(pl.program_id(1) == pl.num_programs(1) - 1)
    def _():
        agg = acc_ref[...].astype(w_ref.dtype)
        out = jnp.dot(agg, w_ref[...], preferred_element_type=jnp.float32) + b_ref[...]
        o_ref[...] = jnp.maximum(out, 0.0).astype(o_ref.dtype)


def _gcn_layer_fc_kernel(a_ref, h_ref, w_ref, b_ref, wfc_ref, bfc_ref,
                         o_ref, acc_ref, *, tk):
    _gcn_accumulate(a_ref, h_ref, acc_ref, tk)

    @pl.when(pl.program_id(1) == pl.num_programs(1) - 1)
    def _():
        agg = acc_ref[...].astype(w_ref.dtype)
        h3 = jnp.maximum(
            jnp.dot(agg, w_ref[...], preferred_element_type=jnp.float32)
            + b_ref[...], 0.0).astype(w_ref.dtype)
        o_ref[...] = (jnp.dot(h3, wfc_ref[...], preferred_element_type=jnp.float32)
                      + bfc_ref[...]).astype(o_ref.dtype)


def _gcn_layer(a_p, h, w, b, *, tm, tk, out_dtype, wfc=None, bfc=None):
    """relu((A_hat @ H) @ W + b), optionally followed by (@ Wfc + bfc)."""
    n_pad = a_p.shape[0]
    c_in = h.shape[1]
    c_mid = w.shape[1]
    c_out = c_mid if wfc is None else wfc.shape[1]
    grid = (n_pad // tm, n_pad // tk)

    in_specs = [
        pl.BlockSpec((tm, tk), lambda i, k: (i, k)),        # A_hat: streamed
        pl.BlockSpec((n_pad, c_in), lambda i, k: (0, 0)),   # H: resident
        pl.BlockSpec((c_in, c_mid), lambda i, k: (0, 0)),   # W: resident
        pl.BlockSpec((1, c_mid), lambda i, k: (0, 0)),      # b: resident
    ]
    args = [a_p, h, w, b]
    if wfc is None:
        kernel = functools.partial(_gcn_layer_kernel, tk=tk)
    else:
        kernel = functools.partial(_gcn_layer_fc_kernel, tk=tk)
        in_specs += [
            pl.BlockSpec((c_mid, c_out), lambda i, k: (0, 0)),
            pl.BlockSpec((1, c_out), lambda i, k: (0, 0)),
        ]
        args += [wfc, bfc]

    flops = 2 * n_pad * n_pad * c_in + 2 * n_pad * c_in * c_mid
    if wfc is not None:
        flops += 2 * n_pad * c_mid * c_out
    bytes_accessed = (sum(arr.size * arr.dtype.itemsize for arr in args)
                      + n_pad * c_out * jnp.dtype(out_dtype).itemsize)

    return pl.pallas_call(
        kernel,
        out_shape=jax.ShapeDtypeStruct((n_pad, c_out), out_dtype),
        grid=grid,
        in_specs=in_specs,
        out_specs=pl.BlockSpec((tm, c_out), lambda i, k: (i, 0)),
        scratch_shapes=[pltpu.VMEM((tm, c_in), jnp.float32)],
        compiler_params=pltpu.CompilerParams(
            dimension_semantics=("parallel", "arbitrary"),
            vmem_limit_bytes=_VMEM_LIMIT,
        ),
        cost_estimate=pl.CostEstimate(flops=int(flops), transcendentals=0,
                                      bytes_accessed=int(bytes_accessed)),
    )(*args)


def _choose_tiles(n, tm, tk):
    if tk is None:
        tk = 512 if n >= 2048 else 128   # >=256-wide contraction fills v6e/v7x MXU
    if tm is None:
        tm = 256 if n >= 2048 else 128
    # keep >= 2 row tiles on the parallel axis so both v7x TensorCores get work
    while tm > 128 and _round_up(n, math.lcm(tm, tk)) // tm < 2:
        tm //= 2
    return tm, tk


# ---------------------------------------------------------------------------
# Forward wrapper: pad lanes/rows, dispatch to the fused-small or tiled path.
# ---------------------------------------------------------------------------
def graph_gcn_forward(a_hat, x, params, *, tm=None, tk=None,
                      compute_dtype=jnp.bfloat16, force_tiled=False):
    """GraphGCN forward (eval mode: dropout(p=0.5) is identity)."""
    w1, b1, w2, b2, w3, b3, wfc, bfc = params
    n = x.shape[0]
    out_channels = wfc.shape[1]

    c_in = _round_up(x.shape[1], LANE)
    c_hid = _round_up(w1.shape[1], LANE)
    c_out = _round_up(out_channels, LANE)

    small = (not force_tiled) and (_round_up(n, LANE) <= _SMALL_PATH_MAX_N)
    if small:
        n_pad = _round_up(n, LANE)
    else:
        tm, tk = _choose_tiles(n, tm, tk)
        n_pad = _round_up(n, math.lcm(tm, tk))

    def pad2(arr, r, c):
        return jnp.pad(arr, ((0, r - arr.shape[0]), (0, c - arr.shape[1])))

    a_p = pad2(a_hat, n_pad, n_pad).astype(compute_dtype)
    x_p = pad2(x, n_pad, c_in).astype(compute_dtype)
    w1_p = pad2(w1, c_in, c_hid).astype(compute_dtype)
    w2_p = pad2(w2, c_hid, c_hid).astype(compute_dtype)
    w3_p = pad2(w3, c_hid, c_hid).astype(compute_dtype)
    wfc_p = pad2(wfc, c_hid, c_out).astype(compute_dtype)
    b1_p = pad2(b1, 1, c_hid).astype(jnp.float32)
    b2_p = pad2(b2, 1, c_hid).astype(jnp.float32)
    b3_p = pad2(b3, 1, c_hid).astype(jnp.float32)
    bfc_p = pad2(bfc, 1, c_out).astype(jnp.float32)

    layer_wb = ((w1_p, b1_p), (w2_p, b2_p), (w3_p, b3_p))

    if small:
        y = _fused_small_forward(a_p, x_p, layer_wb, wfc_p, bfc_p,
                                 out_dtype=jnp.float32)
    else:
        h = x_p
        h = _gcn_layer(a_p, h, w1_p, b1_p, tm=tm, tk=tk, out_dtype=compute_dtype)
        h = _gcn_layer(a_p, h, w2_p, b2_p, tm=tm, tk=tk, out_dtype=compute_dtype)
        y = _gcn_layer(a_p, h, w3_p, b3_p, tm=tm, tk=tk, out_dtype=jnp.float32,
                       wfc=wfc_p, bfc=bfc_p)

    # Padded rows hold relu(b)-valued garbage but never feed real rows (padded
    # columns of A_hat are zero); slice them and the padded feature lanes off.
    return y[:n, :out_channels]


# ---------------------------------------------------------------------------
# Glue: dense normalized adjacency (PyG gcn_norm), params, reference
# ---------------------------------------------------------------------------
def build_normalized_adjacency(edge_index, num_nodes):
    """Dense D^-1/2 (A + I) D^-1/2 matching PyG GCNConv's gcn_norm (plain JAX).
    Note: adds +I unconditionally; do not pass edge_index that already contains
    self-loops or they will be double counted."""
    src = edge_index[0]
    dst = edge_index[1]
    a = jnp.zeros((num_nodes, num_nodes), dtype=jnp.float32)
    a = a.at[dst, src].add(1.0)                     # message flows src -> dst
    a = a + jnp.eye(num_nodes, dtype=jnp.float32)   # add self-loops
    deg = jnp.sum(a, axis=1)
    d_inv_sqrt = jnp.where(deg > 0, 1.0 / jnp.sqrt(deg), 0.0)
    return d_inv_sqrt[:, None] * a * d_inv_sqrt[None, :]


def init_params(key, in_channels, hidden_channels, out_channels):
    """Deterministic synthetic parameters (shapes match the PyTorch module)."""
    ks = jax.random.split(key, 8)

    def glorot(k, fan_in, fan_out):
        limit = jnp.sqrt(6.0 / (fan_in + fan_out))
        return jax.random.uniform(k, (fan_in, fan_out), jnp.float32, -limit, limit)

    w1 = glorot(ks[0], in_channels, hidden_channels)
    b1 = jax.random.normal(ks[1], (1, hidden_channels), jnp.float32) * 0.01
    w2 = glorot(ks[2], hidden_channels, hidden_channels)
    b2 = jax.random.normal(ks[3], (1, hidden_channels), jnp.float32) * 0.01
    w3 = glorot(ks[4], hidden_channels, hidden_channels)
    b3 = jax.random.normal(ks[5], (1, hidden_channels), jnp.float32) * 0.01
    # torch.nn.Linear stores weight as [out, in]; we keep the transposed [in, out]
    wfc = glorot(ks[6], hidden_channels, out_channels)
    bfc = jax.random.normal(ks[7], (1, out_channels), jnp.float32) * 0.01
    return (w1, b1, w2, b2, w3, b3, wfc, bfc)


def reference_forward(a_hat, x, params, compute_dtype=jnp.float32,
                      agg_first=False):
    """Plain-JAX reference.
    agg_first=True mirrors the kernels' (A@H)@W order / bf16-in f32-acc math;
    agg_first=False is the original module order A@(H@W) (identical in f32)."""
    w1, b1, w2, b2, w3, b3, wfc, bfc = params
    cd = compute_dtype
    a = a_hat.astype(cd)
    h = x.astype(cd)
    for w, b in ((w1, b1), (w2, b2), (w3, b3)):
        if agg_first:
            agg = jnp.dot(a, h, preferred_element_type=jnp.float32).astype(cd)
            h = jnp.maximum(
                jnp.dot(agg, w.astype(cd), preferred_element_type=jnp.float32) + b,
                0.0).astype(cd)
        else:
            t = jnp.dot(h, w.astype(cd), preferred_element_type=jnp.float32).astype(cd)
            h = jnp.maximum(
                jnp.dot(a, t, preferred_element_type=jnp.float32) + b,
                0.0).astype(cd)
    return jnp.dot(h, wfc.astype(cd), preferred_element_type=jnp.float32) + bfc


if __name__ == "__main__":
    # Small synthetic problem: 200 nodes on an undirected ring graph
    # (200 -> padded to 256 rows, so the tiled path runs a real 2x2 grid).
    num_nodes = 200
    in_channels = 4
    hidden_channels = 32
    out_channels = 8

    key = jax.random.PRNGKey(0)
    k_x, k_p = jax.random.split(key)

    x = jax.random.normal(k_x, (num_nodes, in_channels), jnp.float32)

    idx = jnp.arange(num_nodes)
    fwd = jnp.stack([idx, (idx + 1) % num_nodes])
    bwd = jnp.stack([(idx + 1) % num_nodes, idx])
    edge_index = jnp.concatenate([fwd, bwd], axis=1).astype(jnp.int32)  # [2, 2N]

    a_hat = build_normalized_adjacency(edge_index, num_nodes)
    params = init_params(k_p, in_channels, hidden_channels, out_channels)

    # References: bf16-matched (same (A@H)@W order as the kernels) + full f32.
    ref_bf16 = reference_forward(a_hat, x, params, compute_dtype=jnp.bfloat16,
                                 agg_first=True)
    ref_f32 = reference_forward(a_hat, x, params, compute_dtype=jnp.float32,
                                agg_first=False)

    # Path 1: small-graph fast path — whole forward in ONE pallas_call.
    out_small = jax.block_until_ready(graph_gcn_forward(a_hat, x, params))
    assert out_small.shape == (num_nodes, out_channels)
    assert out_small.dtype == jnp.float32
    assert jnp.allclose(out_small, ref_bf16, atol=5e-3, rtol=5e-3), \
        "fused-small path: mismatch vs bf16-matched reference"
    assert jnp.allclose(out_small, ref_f32, atol=5e-2, rtol=5e-2), \
        "fused-small path: mismatch vs f32 reference"

    # Path 2: tiled path (forced) — exercises the fused per-layer kernels with
    # a real (row tiles, k tiles) grid and the f32 VMEM accumulator.
    out_tiled = jax.block_until_ready(
        graph_gcn_forward(a_hat, x, params, force_tiled=True, tm=128, tk=128))
    assert out_tiled.shape == (num_nodes, out_channels)
    assert out_tiled.dtype == jnp.float32
    assert jnp.allclose(out_tiled, ref_bf16, atol=5e-3, rtol=5e-3), \
        "tiled path: mismatch vs bf16-matched reference"
    assert jnp.allclose(out_tiled, ref_f32, atol=5e-2, rtol=5e-2), \
        "tiled path: mismatch vs f32 reference"

    print("KERNEL_OK")
</pallas_src>

<mosaic_0001>
module attributes {stable_mosaic.version = 11 : i64} {
  func.func @_fused_small_kernel(%arg0: i32, %arg1: memref<256x256xbf16, #tpu.memory_space<vmem>>, %arg2: memref<256x128xbf16, #tpu.memory_space<vmem>>, %arg3: memref<128x128xbf16, #tpu.memory_space<vmem>>, %arg4: memref<1x128xf32, #tpu.memory_space<vmem>>, %arg5: memref<128x128xbf16, #tpu.memory_space<vmem>>, %arg6: memref<1x128xf32, #tpu.memory_space<vmem>>, %arg7: memref<128x128xbf16, #tpu.memory_space<vmem>>, %arg8: memref<1x128xf32, #tpu.memory_space<vmem>>, %arg9: memref<128x128xbf16, #tpu.memory_space<vmem>>, %arg10: memref<1x128xf32, #tpu.memory_space<vmem>>, %arg11: memref<256x128xf32, #tpu.memory_space<vmem>>) attributes {dimension_semantics = [#tpu.dimension_semantics<arbitrary>], iteration_bounds = array<i64: 1>, scalar_prefetch = 0 : i64, scratch_operands = 0 : i64, tpu.core_type = #tpu.core_type<tc>, window_params = [{pipeline_mode = #tpu.pipeline_mode<synchronous>, transform_indices = @transform_0, window_bounds = array<i64: 256, 256>}, {pipeline_mode = #tpu.pipeline_mode<synchronous>, transform_indices = @transform_1, window_bounds = array<i64: 256, 128>}, {pipeline_mode = #tpu.pipeline_mode<synchronous>, transform_indices = @transform_2, window_bounds = array<i64: 128, 128>}, {pipeline_mode = #tpu.pipeline_mode<synchronous>, transform_indices = @transform_3, window_bounds = array<i64: 1, 128>}, {pipeline_mode = #tpu.pipeline_mode<synchronous>, transform_indices = @transform_4, window_bounds = array<i64: 128, 128>}, {pipeline_mode = #tpu.pipeline_mode<synchronous>, transform_indices = @transform_5, window_bounds = array<i64: 1, 128>}, {pipeline_mode = #tpu.pipeline_mode<synchronous>, transform_indices = @transform_6, window_bounds = array<i64: 128, 128>}, {pipeline_mode = #tpu.pipeline_mode<synchronous>, transform_indices = @transform_7, window_bounds = array<i64: 1, 128>}, {pipeline_mode = #tpu.pipeline_mode<synchronous>, transform_indices = @transform_8, window_bounds = array<i64: 128, 128>}, {pipeline_mode = #tpu.pipeline_mode<synchronous>, transform_indices = @transform_9, window_bounds = array<i64: 1, 128>}, {pipeline_mode = #tpu.pipeline_mode<synchronous>, transform_indices = @transform_10, window_bounds = array<i64: 256, 128>}]} {
    %c0 = arith.constant 0 : index
    %c0_0 = arith.constant 0 : index
    %0 = vector.load %arg1[%c0, %c0_0] : memref<256x256xbf16, #tpu.memory_space<vmem>>, vector<256x256xbf16>
    %c0_1 = arith.constant 0 : index
    %c0_2 = arith.constant 0 : index
    %1 = vector.load %arg2[%c0_1, %c0_2] : memref<256x128xbf16, #tpu.memory_space<vmem>>, vector<256x128xbf16>
    %cst = arith.constant dense<0.000000e+00> : vector<256x128xf32>
    %2 = tpu.matmul %0, %1, %cst {dimension_numbers = #tpu.dot_dimension_numbers<[1], [0], [0], [1], [0, 0, 1, 1], [], []>} : vector<256x256xbf16>, vector<256x128xbf16>, vector<256x128xf32> -> vector<256x128xf32>
    %3 = arith.truncf %2 : vector<256x128xf32> to vector<256x128xbf16>
    %c0_3 = arith.constant 0 : index
    %c0_4 = arith.constant 0 : index
    %4 = vector.load %arg3[%c0_3, %c0_4] : memref<128x128xbf16, #tpu.memory_space<vmem>>, vector<128x128xbf16>
    %cst_5 = arith.constant dense<0.000000e+00> : vector<256x128xf32>
    %5 = tpu.matmul %3, %4, %cst_5 {dimension_numbers = #tpu.dot_dimension_numbers<[1], [0], [0], [1], [0, 0, 1, 1], [], []>} : vector<256x128xbf16>, vector<128x128xbf16>, vector<256x128xf32> -> vector<256x128xf32>
    %c0_6 = arith.constant 0 : index
    %c0_7 = arith.constant 0 : index
    %6 = vector.load %arg4[%c0_6, %c0_7] : memref<1x128xf32, #tpu.memory_space<vmem>>, vector<1x128xf32>
    %7 = vector.broadcast %6 : vector<1x128xf32> to vector<256x128xf32>
    %8 = arith.addf %5, %7 : vector<256x128xf32>
    %cst_8 = arith.constant 0.000000e+00 : f32
    %9 = vector.broadcast %cst_8 : f32 to vector<256x128xf32>
    %10 = arith.maximumf %8, %9 : vector<256x128xf32>
    %11 = arith.truncf %10 : vector<256x128xf32> to vector<256x128xbf16>
    %cst_9 = arith.constant dense<0.000000e+00> : vector<256x128xf32>
    %12 = tpu.matmul %0, %11, %cst_9 {dimension_numbers = #tpu.dot_dimension_numbers<[1], [0], [0], [1], [0, 0, 1, 1], [], []>} : vector<256x256xbf16>, vector<256x128xbf16>, vector<256x128xf32> -> vector<256x128xf32>
    %13 = arith.truncf %12 : vector<256x128xf32> to vector<256x128xbf16>
    %c0_10 = arith.constant 0 : index
    %c0_11 = arith.constant 0 : index
    %14 = vector.load %arg5[%c0_10, %c0_11] : memref<128x128xbf16, #tpu.memory_space<vmem>>, vector<128x128xbf16>
    %cst_12 = arith.constant dense<0.000000e+00> : vector<256x128xf32>
    %15 = tpu.matmul %13, %14, %cst_12 {dimension_numbers = #tpu.dot_dimension_numbers<[1], [0], [0], [1], [0, 0, 1, 1], [], []>} : vector<256x128xbf16>, vector<128x128xbf16>, vector<256x128xf32> -> vector<256x128xf32>
    %c0_13 = arith.constant 0 : index
    %c0_14 = arith.constant 0 : index
    %16 = vector.load %arg6[%c0_13, %c0_14] : memref<1x128xf32, #tpu.memory_space<vmem>>, vector<1x128xf32>
    %17 = vector.broadcast %16 : vector<1x128xf32> to vector<256x128xf32>
    %18 = arith.addf %15, %17 : vector<256x128xf32>
    %cst_15 = arith.constant 0.000000e+00 : f32
    %19 = vector.broadcast %cst_15 : f32 to vector<256x128xf32>
    %20 = arith.maximumf %18, %19 : vector<256x128xf32>
    %21 = arith.truncf %20 : vector<256x128xf32> to vector<256x128xbf16>
    %cst_16 = arith.constant dense<0.000000e+00> : vector<256x128xf32>
    %22 = tpu.matmul %0, %21, %cst_16 {dimension_numbers = #tpu.dot_dimension_numbers<[1], [0], [0], [1], [0, 0, 1, 1], [], []>} : vector<256x256xbf16>, vector<256x128xbf16>, vector<256x128xf32> -> vector<256x128xf32>
    %23 = arith.truncf %22 : vector<256x128xf32> to vector<256x128xbf16>
    %c0_17 = arith.constant 0 : index
    %c0_18 = arith.constant 0 : index
    %24 = vector.load %arg7[%c0_17, %c0_18] : memref<128x128xbf16, #tpu.memory_space<vmem>>, vector<128x128xbf16>
    %cst_19 = arith.constant dense<0.000000e+00> : vector<256x128xf32>
    %25 = tpu.matmul %23, %24, %cst_19 {dimension_numbers = #tpu.dot_dimension_numbers<[1], [0], [0], [1], [0, 0, 1, 1], [], []>} : vector<256x128xbf16>, vector<128x128xbf16>, vector<256x128xf32> -> vector<256x128xf32>
    %c0_20 = arith.constant 0 : index
    %c0_21 = arith.constant 0 : index
    %26 = vector.load %arg8[%c0_20, %c0_21] : memref<1x128xf32, #tpu.memory_space<vmem>>, vector<1x128xf32>
    %27 = vector.broadcast %26 : vector<1x128xf32> to vector<256x128xf32>
    %28 = arith.addf %25, %27 : vector<256x128xf32>
    %cst_22 = arith.constant 0.000000e+00 : f32
    %29 = vector.broadcast %cst_22 : f32 to vector<256x128xf32>
    %30 = arith.maximumf %28, %29 : vector<256x128xf32>
    %31 = arith.truncf %30 : vector<256x128xf32> to vector<256x128xbf16>
    %c0_23 = arith.constant 0 : index
    %c0_24 = arith.constant 0 : index
    %32 = vector.load %arg9[%c0_23, %c0_24] : memref<128x128xbf16, #tpu.memory_space<vmem>>, vector<128x128xbf16>
    %cst_25 = arith.constant dense<0.000000e+00> : vector<256x128xf32>
    %33 = tpu.matmul %31, %32, %cst_25 {dimension_numbers = #tpu.dot_dimension_numbers<[1], [0], [0], [1], [0, 0, 1, 1], [], []>} : vector<256x128xbf16>, vector<128x128xbf16>, vector<256x128xf32> -> vector<256x128xf32>
    %c0_26 = arith.constant 0 : index
    %c0_27 = arith.constant 0 : index
    %34 = vector.load %arg10[%c0_26, %c0_27] : memref<1x128xf32, #tpu.memory_space<vmem>>, vector<1x128xf32>
    %35 = vector.broadcast %34 : vector<1x128xf32> to vector<256x128xf32>
    %36 = arith.addf %33, %35 : vector<256x128xf32>
    %c0_28 = arith.constant 0 : index
    %c0_29 = arith.constant 0 : index
    %37 = vector.load %arg11[%c0_28, %c0_29] : memref<256x128xf32, #tpu.memory_space<vmem>>, vector<256x128xf32>
    tpu.vector_store %arg11[%c0_28, %c0_29], %36 {strides = array<i32>} : memref<256x128xf32, #tpu.memory_space<vmem>>, vector<256x128xf32>,
    return
  }
  func.func @transform_0(%arg0: i32) -> (i32, i32) {
    %c0_i32 = arith.constant 0 : i32
    %c0_i32_0 = arith.constant 0 : i32
    %c0_i32_1 = arith.constant 0 : i32
    return %c0_i32, %c0_i32_0 : i32, i32
  }
  func.func @transform_1(%arg0: i32) -> (i32, i32) {
    %c0_i32 = arith.constant 0 : i32
    %c0_i32_0 = arith.constant 0 : i32
    %c0_i32_1 = arith.constant 0 : i32
    return %c0_i32, %c0_i32_0 : i32, i32
  }
  func.func @transform_2(%arg0: i32) -> (i32, i32) {
    %c0_i32 = arith.constant 0 : i32
    %c0_i32_0 = arith.constant 0 : i32
    %c0_i32_1 = arith.constant 0 : i32
    return %c0_i32, %c0_i32_0 : i32, i32
  }
  func.func @transform_3(%arg0: i32) -> (i32, i32) {
    %c0_i32 = arith.constant 0 : i32
    %c0_i32_0 = arith.constant 0 : i32
    %c0_i32_1 = arith.constant 0 : i32
    return %c0_i32, %c0_i32_0 : i32, i32
  }
  func.func @transform_4(%arg0: i32) -> (i32, i32) {
    %c0_i32 = arith.constant 0 : i32
    %c0_i32_0 = arith.constant 0 : i32
    %c0_i32_1 = arith.constant 0 : i32
    return %c0_i32, %c0_i32_0 : i32, i32
  }
  func.func @transform_5(%arg0: i32) -> (i32, i32) {
    %c0_i32 = arith.constant 0 : i32
    %c0_i32_0 = arith.constant 0 : i32
    %c0_i32_1 = arith.constant 0 : i32
    return %c0_i32, %c0_i32_0 : i32, i32
  }
  func.func @transform_6(%arg0: i32) -> (i32, i32) {
    %c0_i32 = arith.constant 0 : i32
    %c0_i32_0 = arith.constant 0 : i32
    %c0_i32_1 = arith.constant 0 : i32
    return %c0_i32, %c0_i32_0 : i32, i32
  }
  func.func @transform_7(%arg0: i32) -> (i32, i32) {
    %c0_i32 = arith.constant 0 : i32
    %c0_i32_0 = arith.constant 0 : i32
    %c0_i32_1 = arith.constant 0 : i32
    return %c0_i32, %c0_i32_0 : i32, i32
  }
  func.func @transform_8(%arg0: i32) -> (i32, i32) {
    %c0_i32 = arith.constant 0 : i32
    %c0_i32_0 = arith.constant 0 : i32
    %c0_i32_1 = arith.constant 0 : i32
    return %c0_i32, %c0_i32_0 : i32, i32
  }
  func.func @transform_9(%arg0: i32) -> (i32, i32) {
    %c0_i32 = arith.constant 0 : i32
    %c0_i32_0 = arith.constant 0 : i32
    %c0_i32_1 = arith.constant 0 : i32
    return %c0_i32, %c0_i32_0 : i32, i32
  }
  func.func @transform_10(%arg0: i32) -> (i32, i32) {
    %c0_i32 = arith.constant 0 : i32
    %c0_i32_0 = arith.constant 0 : i32
    %c0_i32_1 = arith.constant 0 : i32
    return %c0_i32, %c0_i32_0 : i32, i32
  }
}

</mosaic_0001>

<bundles_post_ra>
// kernel: tpu_custom_call.1
= control target key start
LH: loop header
LB: loop body
LE: loop exit
PB: predicated region body
PF: predicated region fallthrough
CT: control target
= control target key end

     0   :  { %15 = vsyncpa [#allocation3], 0  ;;  %s3582_s0 = inlined_call_operand.hbm [shape: bf16[256,256], index: 0, kind: input, shape index: {}]   ;;  %s3583_s1 = inlined_call_operand.hbm [shape: bf16[256,128], index: 1, kind: input, shape index: {}]   ;;  %s3584_s2 = inlined_call_operand.hbm [shape: bf16[128,128], index: 2, kind: input, shape index: {}]   ;;  %s3585_s3 = inlined_call_operand.vmem [shape: f32[1,128], index: 3, kind: input, shape index: {}]   ;;  %s3586_s4 = inlined_call_operand.hbm [shape: bf16[128,128], index: 4, kind: input, shape index: {}]   ;;  %s3587_s5 = inlined_call_operand.vmem [shape: f32[1,128], index: 5, kind: input, shape index: {}]   ;;  %s3588_s6 = inlined_call_operand.hbm [shape: bf16[128,128], index: 6, kind: input, shape index: {}]   ;;  %s3589_s7 = inlined_call_operand.vmem [shape: f32[1,128], index: 7, kind: input, shape index: {}]   ;;  %s3590_s8 = inlined_call_operand.hbm [shape: bf16[128,128], index: 8, kind: input, shape index: {}]   ;;  %s3591_s9 = inlined_call_operand.vmem [shape: f32[1,128], index: 9, kind: input, shape index: {}]   ;;  %s3592_s10 = inlined_call_operand.hbm [shape: f32[256,128], index: 10, kind: output, shape index: {}]  }
   0x1   :  { %16 = vsyncpa [#allocation6], 0 }
   0x2   :  { %17 = vsyncpa [#allocation9], 0 }
   0x3   :  { %18 = vsyncpa [#allocation12], 0 }
   0x4   :  { %19 = vsyncpa [#allocation4], 0  ;;  %s3105_s13 = smov [#allocation5]   ;;  %s2941_s17 = scalar_lea.hbm %s3583_s1, 2048 }
   0x5   :  { %s37_s14 = sshll.u32 %s3105_s13, 4  ;;  %p2942_p0 = scmp.ne.s32.totalorder %s3583_s1, %s2941_s17  ;;  %s38_s14 = int_to_ptr.vmem [resolvable:$true] %s37_s14 }
   0x6   :  { %p2945_p1 = scmp.lt.u32.totalorder %s2941_s17, %s3583_s1 }
   0x8   :  { %p2947_p2 = pnand %p2945_p1, %p2942_p0 }
   0xa   :  { %2950 = shalt.err (!%p2947_p2)
}
   0xb   :  { %s2951_s22 = scalar_lea.vmem %s38_s14, 2048  ;;  %p2956_p4 = scmp.lt.s32.totalorder %s38_s14, %s38_s14 }
   0xc   :  { %p2952_p3 = scmp.ne.s32.totalorder %s38_s14, %s2951_s22  ;;  %p2957_p5 = scmp.lt.s32.totalorder %s2951_s22, %s2951_s22 }
   0xe   :  { %p2958_p6 = por %p2957_p5, %p2956_p4 }
  0x10   :  { %p2959_p7 = pnand %p2958_p6, %p2952_p3 }
  0x12   :  { %2962 = shalt.err (!%p2959_p7)
}
  0x13   :  { %s3106_s23 = smov 64   ;;  %s3107_s24 = smov 4  }
  0x14   :  { %43 = dma.hbm_to_vmem [thread:$0]  %s3583_s1, 2048, %s38_s14, [#allocation6], %s3106_s23, %s3106_s23, %s3107_s24  }
  0x15   :  { %s3108_s27 = smov [#allocation8]   ;;  %s3109_s29 = smov [#allocation2]  }
  0x16   :  { %s63_s28 = sshll.u32 %s3108_s27, 4  ;;  %s25_s30 = sshll.u32 %s3109_s29, 4  ;;  %s64_s28 = int_to_ptr.vmem [resolvable:$true] %s63_s28  ;;  %s26_s30 = int_to_ptr.vmem [resolvable:$true] %s25_s30 }
  0x17   :  { %s2963_s13 = scalar_lea.hbm %s3586_s4, 1024 }
  0x18   :  { %p2964_p8 = scmp.ne.s32.totalorder %s3586_s4, %s2963_s13  ;;  %p2967_p9 = scmp.lt.u32.totalorder %s2963_s13, %s3586_s4 }
  0x1a   :  { %p2969_p10 = pnand %p2967_p9, %p2964_p8 }
  0x1c   :  { %2972 = shalt.err (!%p2969_p10)
}
  0x1d   :  { %s2973_s1 = scalar_lea.vmem %s64_s28, 1024  ;;  %p2978_p12 = scmp.lt.s32.totalorder %s64_s28, %s64_s28 }
  0x1e   :  { %p2974_p11 = scmp.ne.s32.totalorder %s64_s28, %s2973_s1  ;;  %p2979_p13 = scmp.lt.s32.totalorder %s2973_s1, %s2973_s1 }
  0x20   :  { %p2980_p0 = por %p2979_p13, %p2978_p12 }
  0x22   :  { %p2981_p1 = pnand %p2980_p0, %p2974_p11 }
  0x24   :  { %2984 = shalt.err (!%p2981_p1)
}
  0x25   :  { %69 = dma.hbm_to_vmem [thread:$0]  %s3586_s4, 1024, %s64_s28, [#allocation9], %s3106_s23, %s3106_s23, %s3107_s24  }
  0x26   :  { %s2985_s22 = scalar_lea.hbm %s3582_s0, 4096 }
  0x27   :  { %p2986_p2 = scmp.ne.s32.totalorder %s3582_s0, %s2985_s22  ;;  %p2989_p3 = scmp.lt.u32.totalorder %s2985_s22, %s3582_s0 }
  0x29   :  { %p2991_p4 = pnand %p2989_p3, %p2986_p2 }
  0x2b   :  { %2994 = shalt.err (!%p2991_p4)
}
  0x2c   :  { %s2995_s11 = scalar_lea.vmem %s26_s30, 4096  ;;  %p3000_p6 = scmp.lt.s32.totalorder %s26_s30, %s26_s30 }
  0x2d   :  { %p2996_p5 = scmp.ne.s32.totalorder %s26_s30, %s2995_s11  ;;  %p3001_p7 = scmp.lt.s32.totalorder %s2995_s11, %s2995_s11 }
  0x2f   :  { %p3002_p8 = por %p3001_p7, %p3000_p6 }
  0x31   :  { %p3003_p9 = pnand %p3002_p8, %p2996_p5 }
  0x33   :  { %3006 = shalt.err (!%p3003_p9)
}
  0x34   :  { %s3110_s4 = smov 128   ;;  %s3111_s28 = smov 8  }
  0x35   :  { %31 = dma.hbm_to_vmem [thread:$0]  %s3582_s0, 4096, %s26_s30, [#allocation3], %s3110_s4, %s3110_s4, %s3111_s28  }
  0x36   :  { %s3112_s15 = smov [#allocation7]   ;;  %s3113_s17 = smov [#allocation10]  }
  0x37   :  { %s49_s16 = sshll.u32 %s3112_s15, 4  ;;  %s77_s18 = sshll.u32 %s3113_s17, 4  ;;  %s50_s16 = int_to_ptr.vmem [resolvable:$true] %s49_s16  ;;  %s78_s18 = int_to_ptr.vmem [resolvable:$true] %s77_s18 }
  0x38   :  { %s3007_s19 = scalar_lea.hbm %s3584_s2, 1024 }
  0x39   :  { %p3008_p10 = scmp.ne.s32.totalorder %s3584_s2, %s3007_s19  ;;  %p3011_p11 = scmp.lt.u32.totalorder %s3007_s19, %s3584_s2 }
  0x3b   :  { %p3013_p12 = pnand %p3011_p11, %p3008_p10 }
  0x3d   :  { %3016 = shalt.err (!%p3013_p12)
}
  0x3e   :  { %s3017_s0 = scalar_lea.vmem %s50_s16, 1024  ;;  %p3022_p0 = scmp.lt.s32.totalorder %s50_s16, %s50_s16 }
  0x3f   :  { %p3018_p13 = scmp.ne.s32.totalorder %s50_s16, %s3017_s0  ;;  %p3023_p1 = scmp.lt.s32.totalorder %s3017_s0, %s3017_s0 }
  0x41   :  { %p3024_p2 = por %p3023_p1, %p3022_p0 }
  0x43   :  { %p3025_p3 = pnand %p3024_p2, %p3018_p13 }
  0x45   :  { %3028 = shalt.err (!%p3025_p3)
}
  0x46   :  { %55 = dma.hbm_to_vmem [thread:$0]  %s3584_s2, 1024, %s50_s16, [#allocation6], %s3106_s23, %s3106_s23, %s3107_s24  }
  0x47   :  { %s3029_s11 = scalar_lea.hbm %s3588_s6, 1024 }
  0x48   :  { %p3030_p4 = scmp.ne.s32.totalorder %s3588_s6, %s3029_s11  ;;  %p3033_p5 = scmp.lt.u32.totalorder %s3029_s11, %s3588_s6 }
  0x4a   :  { %p3035_p6 = pnand %p3033_p5, %p3030_p4 }
  0x4c   :  { %3038 = shalt.err (!%p3035_p6)
}
  0x4d   :  { %s3039_s1 = scalar_lea.vmem %s78_s18, 1024  ;;  %p3044_p8 = scmp.lt.s32.totalorder %s78_s18, %s78_s18 }
  0x4e   :  { %p3040_p7 = scmp.ne.s32.totalorder %s78_s18, %s3039_s1  ;;  %p3045_p9 = scmp.lt.s32.totalorder %s3039_s1, %s3039_s1 }
  0x50   :  { %p3046_p10 = por %p3045_p9, %p3044_p8 }
  0x52   :  { %p3047_p11 = pnand %p3046_p10, %p3040_p7 }
  0x54   :  { %3050 = shalt.err (!%p3047_p11)
}
  0x55   :  { %83 = dma.hbm_to_vmem [thread:$0]  %s3588_s6, 1024, %s78_s18, [#allocation9], %s3106_s23, %s3106_s23, %s3107_s24  }
  0x56   :  { %s3114_s14 = smov [#allocation11]   ;;  %s3051_s22 = scalar_lea.hbm %s3590_s8, 1024 }
  0x57   :  { %s91_s19 = sshll.u32 %s3114_s14, 4  ;;  %p3052_p12 = scmp.ne.s32.totalorder %s3590_s8, %s3051_s22  ;;  %s92_s19 = int_to_ptr.vmem [resolvable:$true] %s91_s19 }
  0x58   :  { %p3055_p13 = scmp.lt.u32.totalorder %s3051_s22, %s3590_s8 }
  0x5a   :  { %p3057_p0 = pnand %p3055_p13, %p3052_p12 }
  0x5c   :  { %3060 = shalt.err (!%p3057_p0)
}
  0x5d   :  { %s3061_s27 = scalar_lea.vmem %s92_s19, 1024  ;;  %p3066_p2 = scmp.lt.s32.totalorder %s92_s19, %s92_s19 }
  0x5e   :  { %p3062_p1 = scmp.ne.s32.totalorder %s92_s19, %s3061_s27  ;;  %p3067_p3 = scmp.lt.s32.totalorder %s3061_s27, %s3061_s27 }
  0x60   :  { %p3068_p4 = por %p3067_p3, %p3066_p2 }
  0x62   :  { %p3069_p5 = pnand %p3068_p4, %p3062_p1 }
  0x64   :  { %3072 = shalt.err (!%p3069_p5)
}
  0x65   :  { %97 = dma.hbm_to_vmem [thread:$0]  %s3590_s8, 1024, %s92_s19, [#allocation12], %s3106_s23, %s3106_s23, %s3107_s24  }
  0x66   :  { %3095 = dma.done.wait [#allocation3], 4096  }
  0x67   :  { %3096 = vsyncadd [#allocation3], 4294963200 }
  0x68   :  { %3097 = dma.done.wait [#allocation6], 3072  }
  0x69   :  { %3098 = vsyncadd [#allocation6], 4294964224 }
  0x6a   :  { %3099 = dma.done.wait [#allocation9], 2048  }
  0x6b   :  { %3100 = vsyncadd [#allocation9], 4294965248 }
  0x6c   :  { %3101 = dma.done.wait [#allocation12], 1024  }
  0x6d   :  { %3102 = vsyncadd [#allocation12], 4294966272  ;;  %v2813_v0 = vld [vmem:[#allocation5 + $0x40] sm:$0xff]   ;;  %v2815_v2 = vld [vmem:[#allocation5 + $0x48] sm:$0xff]  }
  0x6e   :  { %v2814_v1 = vld [vmem:[#allocation5] sm:$0xff]   ;;  %2178 = vmatprep.subr.bf16.mxu0 %v2813_v0  ;;  %v2816_v3 = vld [vmem:[#allocation5 + $0x8] sm:$0xff]   ;;  %v2817_v4 = vld [vmem:[#allocation5 + $0x50] sm:$0xff]  }
  0x6f   :  { %2179 = vmatpush3.bf16.msra.mxu0 %v2814_v1  ;;  %v2818_v5 = vld [vmem:[#allocation5 + $0x10] sm:$0xff]   ;;  %v2819_v6 = vld [vmem:[#allocation5 + $0x58] sm:$0xff]   ;;  %v2821_v8 = vld [vmem:[#allocation5 + $0x60] sm:$0xff]  }
  0x70   :  { %2180 = vmatprep.subr.bf16.mxu0 %v2815_v2  ;;  %v2820_v7 = vld [vmem:[#allocation5 + $0x18] sm:$0xff]   ;;  %v2822_v9 = vld [vmem:[#allocation5 + $0x20] sm:$0xff]   ;;  %v2823_v10 = vld [vmem:[#allocation5 + $0x68] sm:$0xff]  }
  0x71   :  { %v3261_v11 = vld [vmem:[#allocation2 + $0x4] ss:$8 sps:$4 sm:$0xff]   ;;  %v2825_v13 = vld [vmem:[#allocation5 + $0x70] sm:$0xff]   ;;  %v2827_v15 = vld [vmem:[#allocation5 + $0x78] sm:$0xff]  }
  0x72   :  { %471 = vmatprep.mubr.bf16.mxu0 %v3261_v11  ;;  %v2824_v12 = vld [vmem:[#allocation5 + $0x28] sm:$0xff]   ;;  %v2826_v14 = vld [vmem:[#allocation5 + $0x30] sm:$0xff]   ;;  %v2828_v16 = vld [vmem:[#allocation5 + $0x38] sm:$0xff]  }
  0x73   :  { %2181 = vmatpush3.bf16.msra.mxu0 %v2816_v3  ;;  %v3264_v17 = vld [vmem:[#allocation2] ss:$8 sps:$4 sm:$0xff]   ;;  %v3266_v18 = vld [vmem:[#allocation2 + $0x14] ss:$8 sps:$4 sm:$0xff]   ;;  %v3270_v19 = vld [vmem:[#allocation2 + $0x10] ss:$8 sps:$4 sm:$0xff]  }
  0x74   :  { %2182 = vmatprep.subr.bf16.mxu0 %v2817_v4  ;;  %v3272_v20 = vld [vmem:[#allocation2 + $0x24] ss:$8 sps:$4 sm:$0xff]   ;;  %v2879_v23 = vld [vmem:[#allocation7 + $0x10] sm:$0xff]   ;;  %v3276_v24 = vld [vmem:[#allocation2 + $0x20] ss:$8 sps:$4 sm:$0xff]  }
  0x75   :  { %v2877_v21 = vld [vmem:[#allocation7] sm:$0xff]   ;;  %v2878_v22 = vld [vmem:[#allocation7 + $0x8] sm:$0xff]   ;;  %v2880_v25 = vld [vmem:[#allocation7 + $0x18] sm:$0xff]  }
  0x76   :  { %2610 = vmatprep.subr.bf16.mxu1 %v2877_v21  ;;  %v3278_v26 = vld [vmem:[#allocation2 + $0x34] ss:$8 sps:$4 sm:$0xff]   ;;  %v3282_v27 = vld [vmem:[#allocation2 + $0x30] ss:$8 sps:$4 sm:$0xff]   ;;  %v3284_v28 = vld [vmem:[#allocation2 + $0x44] ss:$8 sps:$4 sm:$0xff]  }
  0x77   :  { %2183 = vmatpush3.bf16.msra.mxu0 %v2818_v5  ;;  %2611 = vmatpush3.bf16.msra.mxu1 %v2877_v21  ;;  %v3288_v29 = vld [vmem:[#allocation2 + $0x40] ss:$8 sps:$4 sm:$0xff]   ;;  %v3290_v30 = vld [vmem:[#allocation2 + $0x54] ss:$8 sps:$4 sm:$0xff]   ;;  %v3294_v31 = vld [vmem:[#allocation2 + $0x50] ss:$8 sps:$4 sm:$0xff]  }
  0x78   :  { %2184 = vmatprep.subr.bf16.mxu0 %v2819_v6  ;;  %2612 = vmatprep.subr.bf16.mxu1 %v2878_v22  ;;  %v3296_v32 = vld [vmem:[#allocation2 + $0x64] ss:$8 sps:$4 sm:$0xff]   ;;  %v3300_v33 = vld [vmem:[#allocation2 + $0x60] ss:$8 sps:$4 sm:$0xff]   ;;  %v3302_v34 = vld [vmem:[#allocation2 + $0x74] ss:$8 sps:$4 sm:$0xff]  }
  0x79   :  { %v3306_v35 = vld [vmem:[#allocation2 + $0x70] ss:$8 sps:$4 sm:$0xff]   ;;  %v3308_v36 = vld [vmem:[#allocation2 + $0x84] ss:$8 sps:$4 sm:$0xff]   ;;  %v3312_v37 = vld [vmem:[#allocation2 + $0x80] ss:$8 sps:$4 sm:$0xff]  }
  0x7a   :  { %v3314_v38 = vld [vmem:[#allocation2 + $0x94] ss:$8 sps:$4 sm:$0xff]   ;;  %v3318_v39 = vld [vmem:[#allocation2 + $0x90] ss:$8 sps:$4 sm:$0xff]   ;;  %v3320_v40 = vld [vmem:[#allocation2 + $0xa4] ss:$8 sps:$4 sm:$0xff]  }
  0x7b   :  { %2185 = vmatpush3.bf16.msra.mxu0 %v2820_v7  ;;  %2613 = vmatpush3.bf16.msra.mxu1 %v2878_v22  ;;  %v3324_v41 = vld [vmem:[#allocation2 + $0xa0] ss:$8 sps:$4 sm:$0xff]   ;;  %v3326_v42 = vld [vmem:[#allocation2 + $0xb4] ss:$8 sps:$4 sm:$0xff]   ;;  %v3330_v44 = vld [vmem:[#allocation2 + $0xb0] ss:$8 sps:$4 sm:$0xff]  }
  0x7c   :  { %2186 = vmatprep.subr.bf16.mxu0 %v2821_v8  ;;  %2614 = vmatprep.subr.bf16.mxu1 %v2879_v23  ;;  %v2881_v43 = vld [vmem:[#allocation7 + $0x20] sm:$0xff]   ;;  %v2882_v46 = vld [vmem:[#allocation7 + $0x28] sm:$0xff]   ;;  %v2883_v47 = vld [vmem:[#allocation7 + $0x30] sm:$0xff]  }
  0x7d   :  { %v3332_v45 = vld [vmem:[#allocation2 + $0xc4] ss:$8 sps:$4 sm:$0xff]   ;;  %v3336_v48 = vld [vmem:[#allocation2 + $0xc0] ss:$8 sps:$4 sm:$0xff]   ;;  %v3338_v49 = vld [vmem:[#allocation2 + $0xd4] ss:$8 sps:$4 sm:$0xff]  }
  0x7e   :  { %v2884_v50 = vld [vmem:[#allocation7 + $0x38] sm:$0xff]   ;;  %v3344_v52 = vld [vmem:[#allocation2 + $0xe4] ss:$8 sps:$4 sm:$0xff]   ;;  %v3348_v53 = vld [vmem:[#allocation2 + $0xe0] ss:$8 sps:$4 sm:$0xff]  }
  0x7f   :  { %2187 = vmatpush3.bf16.msra.mxu0 %v2822_v9  ;;  %2615 = vmatpush3.bf16.msra.mxu1 %v2879_v23  ;;  %v3342_v51 = vld [vmem:[#allocation2 + $0xd0] ss:$8 sps:$4 sm:$0xff]   ;;  %v3350_v54 = vld [vmem:[#allocation2 + $0xf4] ss:$8 sps:$4 sm:$0xff]  }
  0x80   :  { %2188 = vmatprep.subr.bf16.mxu0 %v2823_v10  ;;  %2616 = vmatprep.subr.bf16.mxu1 %v2880_v25  ;;  %v3354_v55 = vld [vmem:[#allocation2 + $0xf0] ss:$8 sps:$4 sm:$0xff]  }
  0x83   :  { %2189 = vmatpush3.bf16.msra.mxu0 %v2824_v12  ;;  %2617 = vmatpush3.bf16.msra.mxu1 %v2880_v25 }
  0x84   :  { %2190 = vmatprep.subr.bf16.mxu0 %v2825_v13  ;;  %2618 = vmatprep.subr.bf16.mxu1 %v2881_v43 }
  0x87   :  { %2191 = vmatpush3.bf16.msra.mxu0 %v2826_v14  ;;  %2619 = vmatpush3.bf16.msra.mxu1 %v2881_v43 }
  0x88   :  { %2192 = vmatprep.subr.bf16.mxu0 %v2827_v15  ;;  %2620 = vmatprep.subr.bf16.mxu1 %v2882_v46 }
  0x8b   :  { %2193 = vmatpush3.bf16.msra.mxu0 %v2828_v16  ;;  %2621 = vmatpush3.bf16.msra.mxu1 %v2882_v46 }
  0x8c   :  { %2622 = vmatprep.subr.bf16.mxu1 %v2883_v47 }
  0x8e   :  { %472 = vmatmul.mubr.bf16.vlgmr.msra.gmra.mrb[0].mxu0 %v3264_v17 }
  0x8f   :  { %479 = vmatprep.mubr.bf16.mxu0 %v3266_v18  ;;  %2623 = vmatpush3.bf16.msra.mxu1 %v2883_v47 }
  0x90   :  { %2624 = vmatprep.subr.bf16.mxu1 %v2884_v50 }
  0x93   :  { %2625 = vmatpush3.bf16.msra.mxu1 %v2884_v50 }
  0x96   :  { %480 = vmatmul.mubr.bf16.gmra.mrb[4].mxu0 %v3270_v19 }
  0x97   :  { %487 = vmatprep.mubr.bf16.mxu0 %v3272_v20 }
  0x9e   :  { %488 = vmatmul.mubr.bf16.gmra.mrb[8].mxu0 %v3276_v24 }
  0x9f   :  { %495 = vmatprep.mubr.bf16.mxu0 %v3278_v26 }
  0xa6   :  { %496 = vmatmul.mubr.bf16.gmra.mrb[12].mxu0 %v3282_v27 }
  0xa7   :  { %503 = vmatprep.mubr.bf16.mxu0 %v3284_v28 }
  0xae   :  { %504 = vmatmul.mubr.bf16.gmra.mrb[16].mxu0 %v3288_v29 }
  0xaf   :  { %511 = vmatprep.mubr.bf16.mxu0 %v3290_v30 }
  0xb6   :  { %512 = vmatmul.mubr.bf16.gmra.mrb[20].mxu0 %v3294_v31 }
  0xb7   :  { %519 = vmatprep.mubr.bf16.mxu0 %v3296_v32 }
  0xbe   :  { %520 = vmatmul.mubr.bf16.gmra.mrb[24].mxu0 %v3300_v33 }
  0xbf   :  { %527 = vmatprep.mubr.bf16.mxu0 %v3302_v34 }
  0xc6   :  { %528 = vmatmul.mubr.bf16.gmra.mrb[28].mxu0 %v3306_v35 }
  0xc7   :  { %535 = vmatprep.mubr.bf16.mxu0 %v3308_v36 }
  0xce   :  { %536 = vmatmul.mubr.bf16.gmra.mrb[32].mxu0 %v3312_v37 }
  0xcf   :  { %543 = vmatprep.mubr.bf16.mxu0 %v3314_v38 }
  0xd6   :  { %544 = vmatmul.mubr.bf16.gmra.mrb[36].mxu0 %v3318_v39 }
  0xd7   :  { %551 = vmatprep.mubr.bf16.mxu0 %v3320_v40 }
  0xde   :  { %552 = vmatmul.mubr.bf16.gmra.mrb[40].mxu0 %v3324_v41 }
  0xdf   :  { %559 = vmatprep.mubr.bf16.mxu0 %v3326_v42 }
  0xe6   :  { %560 = vmatmul.mubr.bf16.gmra.mrb[44].mxu0 %v3330_v44 }
  0xe7   :  { %567 = vmatprep.mubr.bf16.mxu0 %v3332_v45 }
  0xee   :  { %568 = vmatmul.mubr.bf16.gmra.mrb[48].mxu0 %v3336_v48 }
  0xef   :  { %575 = vmatprep.mubr.bf16.mxu0 %v3338_v49 }
  0xf6   :  { %576 = vmatmul.mubr.bf16.gmra.mrb[52].mxu0 %v3342_v51 }
  0xf7   :  { %583 = vmatprep.mubr.bf16.mxu0 %v3344_v52 }
  0xfe   :  { %584 = vmatmul.mubr.bf16.gmra.mrb[56].mxu0 %v3348_v53 }
  0xff   :  { %591 = vmatprep.mubr.bf16.mxu0 %v3350_v54 }
 0x106   :  { %592 = vmatmul.mubr.bf16.gmra.mrb[60].mxu0 %v3354_v55 }
 0x161   :  { %v2194_v56 = vpop.f32.mrb[0].mxu0 }
 0x162   :  { %v2195_v57 = vpop.f32.mrb[1].mxu0 }
 0x163   :  { %v2196_v58 = vadd.f32 %v2195_v57, %v2194_v56  ;;  %v2197_v59 = vpop.f32.mrb[2].mxu0 }
 0x164   :  { %v2198_v60 = vpop.f32.mrb[3].mxu0 }
 0x165   :  { %v2199_v61 = vadd.f32 %v2198_v60, %v2197_v59 }
 0x167   :  { %v600_v62 = vpack.c.bf16 %v2199_v61, %v2196_v58 }
 0x169   :  { %v2200_v63 = vpop.f32.mrb[4].mxu0  ;;  %2626 = vmatprep.mubr.bf16.mxu1 %v600_v62 }
 0x16a   :  { %v2201_v0 = vpop.f32.mrb[5].mxu0 }
 0x16b   :  { %v2202_v1 = vadd.f32 %v2201_v0, %v2200_v63  ;;  %v2203_v2 = vpop.f32.mrb[6].mxu0 }
 0x16c   :  { %v2204_v3 = vpop.f32.mrb[7].mxu0 }
 0x16d   :  { %v2205_v4 = vadd.f32 %v2204_v3, %v2203_v2 }
 0x16f   :  { %v601_v5 = vpack.c.bf16 %v2205_v4, %v2202_v1 }
 0x171   :  { %v2206_v6 = vpop.f32.mrb[8].mxu0  ;;  %2627 = vmatmul.mubr.bf16.vlgmr.msra.gmra.mrb[0].mxu1 %v601_v5 }
 0x172   :  { %v2207_v7 = vpop.f32.mrb[9].mxu0 }
 0x173   :  { %v2208_v8 = vadd.f32 %v2207_v7, %v2206_v6  ;;  %v2209_v9 = vpop.f32.mrb[10].mxu0 }
 0x174   :  { %v2210_v10 = vpop.f32.mrb[11].mxu0 }
 0x175   :  { %v2211_v12 = vadd.f32 %v2210_v10, %v2209_v9 }
 0x177   :  { %v602_v13 = vpack.c.bf16 %v2211_v12, %v2208_v8 }
 0x179   :  { %v2212_v14 = vpop.f32.mrb[12].mxu0  ;;  %2630 = vmatprep.mubr.bf16.mxu1 %v602_v13 }
 0x17a   :  { %v2213_v15 = vpop.f32.mrb[13].mxu0 }
 0x17b   :  { %v2214_v16 = vadd.f32 %v2213_v15, %v2212_v14  ;;  %v2215_v21 = vpop.f32.mrb[14].mxu0 }
 0x17c   :  { %v2216_v22 = vpop.f32.mrb[15].mxu0 }
 0x17d   :  { %v2217_v23 = vadd.f32 %v2216_v22, %v2215_v21 }
 0x17f   :  { %v603_v25 = vpack.c.bf16 %v2217_v23, %v2214_v16 }
 0x181   :  { %v2218_v43 = vpop.f32.mrb[16].mxu0  ;;  %2631 = vmatmul.mubr.bf16.gmra.mrb[4].mxu1 %v603_v25 }
 0x182   :  { %v2219_v46 = vpop.f32.mrb[17].mxu0 }
 0x183   :  { %v2220_v47 = vadd.f32 %v2219_v46, %v2218_v43  ;;  %v2221_v50 = vpop.f32.mrb[18].mxu0 }
 0x184   :  { %v2222_v56 = vpop.f32.mrb[19].mxu0 }
 0x185   :  { %v2223_v57 = vadd.f32 %v2222_v56, %v2221_v50 }
 0x187   :  { %v604_v58 = vpack.c.bf16 %v2223_v57, %v2220_v47 }
 0x189   :  { %v2224_v59 = vpop.f32.mrb[20].mxu0  ;;  %2634 = vmatprep.mubr.bf16.mxu1 %v604_v58 }
 0x18a   :  { %v2225_v60 = vpop.f32.mrb[21].mxu0 }
 0x18b   :  { %v2226_v61 = vadd.f32 %v2225_v60, %v2224_v59  ;;  %v2227_v62 = vpop.f32.mrb[22].mxu0 }
 0x18c   :  { %v2228_v63 = vpop.f32.mrb[23].mxu0 }
 0x18d   :  { %v2229_v0 = vadd.f32 %v2228_v63, %v2227_v62 }
 0x18f   :  { %v605_v1 = vpack.c.bf16 %v2229_v0, %v2226_v61 }
 0x191   :  { %v2230_v2 = vpop.f32.mrb[24].mxu0  ;;  %2635 = vmatmul.mubr.bf16.gmra.mrb[8].mxu1 %v605_v1 }
 0x192   :  { %v2231_v3 = vpop.f32.mrb[25].mxu0 }
 0x193   :  { %v2232_v4 = vadd.f32 %v2231_v3, %v2230_v2  ;;  %v2233_v5 = vpop.f32.mrb[26].mxu0 }
 0x194   :  { %v2234_v6 = vpop.f32.mrb[27].mxu0 }
 0x195   :  { %v2235_v7 = vadd.f32 %v2234_v6, %v2233_v5 }
 0x197   :  { %v606_v8 = vpack.c.bf16 %v2235_v7, %v2232_v4 }
 0x199   :  { %v2236_v9 = vpop.f32.mrb[28].mxu0  ;;  %2638 = vmatprep.mubr.bf16.mxu1 %v606_v8 }
 0x19a   :  { %v2237_v10 = vpop.f32.mrb[29].mxu0 }
 0x19b   :  { %v2238_v12 = vadd.f32 %v2237_v10, %v2236_v9  ;;  %v2239_v13 = vpop.f32.mrb[30].mxu0 }
 0x19c   :  { %v2240_v14 = vpop.f32.mrb[31].mxu0 }
 0x19d   :  { %v2241_v15 = vadd.f32 %v2240_v14, %v2239_v13 }
 0x19f   :  { %v607_v16 = vpack.c.bf16 %v2241_v15, %v2238_v12 }
 0x1a1   :  { %v2242_v21 = vpop.f32.mrb[32].mxu0  ;;  %2639 = vmatmul.mubr.bf16.gmra.mrb[12].mxu1 %v607_v16 }
 0x1a2   :  { %v2243_v22 = vpop.f32.mrb[33].mxu0 }
 0x1a3   :  { %v2244_v23 = vadd.f32 %v2243_v22, %v2242_v21  ;;  %v2245_v25 = vpop.f32.mrb[34].mxu0 }
 0x1a4   :  { %v2246_v43 = vpop.f32.mrb[35].mxu0 }
 0x1a5   :  { %v2247_v46 = vadd.f32 %v2246_v43, %v2245_v25 }
 0x1a7   :  { %v608_v47 = vpack.c.bf16 %v2247_v46, %v2244_v23 }
 0x1a9   :  { %v2248_v50 = vpop.f32.mrb[36].mxu0  ;;  %2642 = vmatprep.mubr.bf16.mxu1 %v608_v47 }
 0x1aa   :  { %v2249_v56 = vpop.f32.mrb[37].mxu0 }
 0x1ab   :  { %v2250_v57 = vadd.f32 %v2249_v56, %v2248_v50  ;;  %v2251_v58 = vpop.f32.mrb[38].mxu0 }
 0x1ac   :  { %v2252_v59 = vpop.f32.mrb[39].mxu0 }
 0x1ad   :  { %v2253_v60 = vadd.f32 %v2252_v59, %v2251_v58 }
 0x1af   :  { %v609_v61 = vpack.c.bf16 %v2253_v60, %v2250_v57 }
 0x1b1   :  { %v2254_v62 = vpop.f32.mrb[40].mxu0  ;;  %2643 = vmatmul.mubr.bf16.gmra.mrb[16].mxu1 %v609_v61 }
 0x1b2   :  { %v2255_v63 = vpop.f32.mrb[41].mxu0 }
 0x1b3   :  { %v2256_v0 = vadd.f32 %v2255_v63, %v2254_v62  ;;  %v2257_v1 = vpop.f32.mrb[42].mxu0 }
 0x1b4   :  { %v2258_v2 = vpop.f32.mrb[43].mxu0 }
 0x1b5   :  { %v2259_v3 = vadd.f32 %v2258_v2, %v2257_v1 }
 0x1b7   :  { %v610_v4 = vpack.c.bf16 %v2259_v3, %v2256_v0 }
 0x1b9   :  { %v2260_v5 = vpop.f32.mrb[44].mxu0  ;;  %2646 = vmatprep.mubr.bf16.mxu1 %v610_v4 }
 0x1ba   :  { %v2261_v6 = vpop.f32.mrb[45].mxu0 }
 0x1bb   :  { %v2262_v7 = vadd.f32 %v2261_v6, %v2260_v5  ;;  %v2263_v8 = vpop.f32.mrb[46].mxu0 }
 0x1bc   :  { %v2264_v9 = vpop.f32.mrb[47].mxu0 }
 0x1bd   :  { %v2265_v10 = vadd.f32 %v2264_v9, %v2263_v8  ;;  %v3361_v8 = vld [vmem:[%s3585_s3] ss:$0 sm:$0xff] }
 0x1bf   :  { %v611_v12 = vpack.c.bf16 %v2265_v10, %v2262_v7 }
 0x1c1   :  { %v2266_v13 = vpop.f32.mrb[48].mxu0  ;;  %2647 = vmatmul.mubr.bf16.gmra.mrb[20].mxu1 %v611_v12 }
 0x1c2   :  { %v2267_v14 = vpop.f32.mrb[49].mxu0 }
 0x1c3   :  { %v2268_v15 = vadd.f32 %v2267_v14, %v2266_v13  ;;  %v2269_v16 = vpop.f32.mrb[50].mxu0 }
 0x1c4   :  { %v2270_v21 = vpop.f32.mrb[51].mxu0 }
 0x1c5   :  { %v2271_v22 = vadd.f32 %v2270_v21, %v2269_v16 }
 0x1c7   :  { %v612_v23 = vpack.c.bf16 %v2271_v22, %v2268_v15 }
 0x1c9   :  { %v2272_v25 = vpop.f32.mrb[52].mxu0  ;;  %2650 = vmatprep.mubr.bf16.mxu1 %v612_v23 }
 0x1ca   :  { %v2273_v43 = vpop.f32.mrb[53].mxu0 }
 0x1cb   :  { %v2274_v46 = vadd.f32 %v2273_v43, %v2272_v25  ;;  %v2275_v47 = vpop.f32.mrb[54].mxu0 }
 0x1cc   :  { %v2276_v50 = vpop.f32.mrb[55].mxu0 }
 0x1cd   :  { %v2277_v56 = vadd.f32 %v2276_v50, %v2275_v47 }
 0x1cf   :  { %v613_v57 = vpack.c.bf16 %v2277_v56, %v2274_v46 }
 0x1d1   :  { %v2278_v58 = vpop.f32.mrb[56].mxu0  ;;  %2651 = vmatmul.mubr.bf16.gmra.mrb[24].mxu1 %v613_v57 }
 0x1d2   :  { %v2279_v59 = vpop.f32.mrb[57].mxu0 }
 0x1d3   :  { %v2280_v60 = vadd.f32 %v2279_v59, %v2278_v58  ;;  %v2281_v61 = vpop.f32.mrb[58].mxu0 }
 0x1d4   :  { %v2282_v62 = vpop.f32.mrb[59].mxu0 }
 0x1d5   :  { %v2283_v63 = vadd.f32 %v2282_v62, %v2281_v61 }
 0x1d7   :  { %v614_v0 = vpack.c.bf16 %v2283_v63, %v2280_v60 }
 0x1d9   :  { %v2284_v1 = vpop.f32.mrb[60].mxu0  ;;  %2654 = vmatprep.mubr.bf16.mxu1 %v614_v0 }
 0x1da   :  { %v2285_v2 = vpop.f32.mrb[61].mxu0 }
 0x1db   :  { %v2286_v3 = vadd.f32 %v2285_v2, %v2284_v1  ;;  %v2287_v4 = vpop.f32.mrb[62].mxu0 }
 0x1dc   :  { %v2288_v5 = vpop.f32.mrb[63].mxu0 }
 0x1dd   :  { %v2289_v6 = vadd.f32 %v2288_v5, %v2287_v4 }
 0x1df   :  { %v615_v7 = vpack.c.bf16 %v2289_v6, %v2286_v3 }
 0x1e1   :  { %2655 = vmatmul.mubr.bf16.gmra.mrb[28].mxu1 %v615_v7 }
 0x1e2   :  { %928 = vmatprep.mubr.bf16.mxu1 %v3261_v11 }
 0x244   :  { %v2628_v9 = vpop.f32.mrb[0].mxu1 }
 0x245   :  { %v730_v10 = vadd.f32 %v2628_v9, %v3361_v8  ;;  %v721_v12 = vpop.f32.mrb[1].mxu1 }
 0x246   :  { %v722_v13 = vadd.f32 %v3361_v8, %v721_v12  ;;  %v2629_v14 = vpop.f32.mrb[2].mxu1 }
 0x247   :  { %v733_v15 = vadd.f32 %v2629_v14, %v3361_v8  ;;  %v724_v16 = vpop.f32.mrb[3].mxu1  ;;  %v850_v22 = vmax.f32 %v730_v10, 0.0 }
 0x248   :  { %v725_v21 = vadd.f32 %v3361_v8, %v724_v16  ;;  %v848_v11 = vmax.f32 %v722_v13, 0.0 }
 0x249   :  { %v851_v23 = vmax.f32 %v733_v15, 0.0 }
 0x24a   :  { %v849_v25 = vmax.f32 %v725_v21, 0.0 }
 0x24b   :  { %v881_v43 = vpack.c.bf16 %v851_v23, %v850_v22 }
 0x24c   :  { %v880_v46 = vpack.c.bf16 %v849_v25, %v848_v11 }
 0x254   :  { %v2632_v47 = vpop.f32.mrb[4].mxu1 }
 0x255   :  { %v746_v50 = vadd.f32 %v2632_v47, %v3361_v8  ;;  %v737_v56 = vpop.f32.mrb[5].mxu1 }
 0x256   :  { %v738_v57 = vadd.f32 %v3361_v8, %v737_v56  ;;  %v2633_v58 = vpop.f32.mrb[6].mxu1 }
 0x257   :  { %v749_v59 = vadd.f32 %v2633_v58, %v3361_v8  ;;  %v740_v60 = vpop.f32.mrb[7].mxu1  ;;  %v854_v62 = vmax.f32 %v746_v50, 0.0 }
 0x258   :  { %v741_v61 = vadd.f32 %v3361_v8, %v740_v60  ;;  %v852_v0 = vmax.f32 %v738_v57, 0.0 }
 0x259   :  { %v855_v63 = vmax.f32 %v749_v59, 0.0 }
 0x25a   :  { %v853_v1 = vmax.f32 %v741_v61, 0.0 }
 0x25b   :  { %v3371_v2 = vpack.c.bf16 %v855_v63, %v854_v62 }
 0x25c   :  { %v882_v3 = vpack.c.bf16 %v853_v1, %v852_v0 }
 0x264   :  { %v2636_v4 = vpop.f32.mrb[8].mxu1 }
 0x265   :  { %v762_v5 = vadd.f32 %v2636_v4, %v3361_v8  ;;  %v753_v6 = vpop.f32.mrb[9].mxu1 }
 0x266   :  { %v754_v7 = vadd.f32 %v3361_v8, %v753_v6  ;;  %v2637_v9 = vpop.f32.mrb[10].mxu1 }
 0x267   :  { %v765_v10 = vadd.f32 %v2637_v9, %v3361_v8  ;;  %v756_v12 = vpop.f32.mrb[11].mxu1  ;;  %v858_v14 = vmax.f32 %v762_v5, 0.0 }
 0x268   :  { %v757_v13 = vadd.f32 %v3361_v8, %v756_v12  ;;  %v856_v16 = vmax.f32 %v754_v7, 0.0 }
 0x269   :  { %v859_v15 = vmax.f32 %v765_v10, 0.0 }
 0x26a   :  { %v857_v21 = vmax.f32 %v757_v13, 0.0 }
 0x26b   :  { %v3377_v22 = vpack.c.bf16 %v859_v15, %v858_v14 }
 0x26c   :  { %v3379_v23 = vpack.c.bf16 %v857_v21, %v856_v16 }
 0x274   :  { %v2640_v11 = vpop.f32.mrb[12].mxu1 }
 0x275   :  { %v778_v25 = vadd.f32 %v2640_v11, %v3361_v8  ;;  %v769_v47 = vpop.f32.mrb[13].mxu1 }
 0x276   :  { %v770_v50 = vadd.f32 %v3361_v8, %v769_v47  ;;  %v2641_v56 = vpop.f32.mrb[14].mxu1 }
 0x277   :  { %v781_v57 = vadd.f32 %v2641_v56, %v3361_v8  ;;  %v772_v58 = vpop.f32.mrb[15].mxu1  ;;  %v862_v60 = vmax.f32 %v778_v25, 0.0 }
 0x278   :  { %v773_v59 = vadd.f32 %v3361_v8, %v772_v58  ;;  %v860_v62 = vmax.f32 %v770_v50, 0.0 }
 0x279   :  { %v863_v61 = vmax.f32 %v781_v57, 0.0 }
 0x27a   :  { %v861_v63 = vmax.f32 %v773_v59, 0.0 }
 0x27b   :  { %v3385_v0 = vpack.c.bf16 %v863_v61, %v862_v60 }
 0x27c   :  { %v3387_v1 = vpack.c.bf16 %v861_v63, %v860_v62 }
 0x284   :  { %v2644_v4 = vpop.f32.mrb[16].mxu1 }
 0x285   :  { %v794_v5 = vadd.f32 %v2644_v4, %v3361_v8  ;;  %v785_v6 = vpop.f32.mrb[17].mxu1 }
 0x286   :  { %v786_v7 = vadd.f32 %v3361_v8, %v785_v6  ;;  %v2645_v9 = vpop.f32.mrb[18].mxu1 }
 0x287   :  { %v797_v10 = vadd.f32 %v2645_v9, %v3361_v8  ;;  %v788_v12 = vpop.f32.mrb[19].mxu1  ;;  %v866_v14 = vmax.f32 %v794_v5, 0.0 }
 0x288   :  { %v789_v13 = vadd.f32 %v3361_v8, %v788_v12  ;;  %v864_v16 = vmax.f32 %v786_v7, 0.0 }
 0x289   :  { %v867_v15 = vmax.f32 %v797_v10, 0.0 }
 0x28a   :  { %v865_v21 = vmax.f32 %v789_v13, 0.0 }
 0x28b   :  { %v889_v11 = vpack.c.bf16 %v867_v15, %v866_v14 }
 0x28c   :  { %v888_v25 = vpack.c.bf16 %v865_v21, %v864_v16 }
 0x28e   :  { %2314 = vmatprep.subr.bf16.mxu1 %v888_v25 }
 0x28f   :  { %2315 = vmatpush3.bf16.msra.mxu1 %v880_v46 }
 0x290   :  { %2316 = vmatprep.subr.bf16.mxu1 %v889_v11 }
 0x293   :  { %2317 = vmatpush3.bf16.msra.mxu1 %v881_v43 }
 0x294   :  { %v2648_v47 = vpop.f32.mrb[20].mxu1 }
 0x295   :  { %v810_v50 = vadd.f32 %v2648_v47, %v3361_v8  ;;  %v801_v56 = vpop.f32.mrb[21].mxu1 }
 0x296   :  { %v802_v57 = vadd.f32 %v3361_v8, %v801_v56  ;;  %v2649_v58 = vpop.f32.mrb[22].mxu1 }
 0x297   :  { %v813_v59 = vadd.f32 %v2649_v58, %v3361_v8  ;;  %v804_v60 = vpop.f32.mrb[23].mxu1  ;;  %v870_v62 = vmax.f32 %v810_v50, 0.0 }
 0x298   :  { %v805_v61 = vadd.f32 %v3361_v8, %v804_v60  ;;  %v868_v4 = vmax.f32 %v802_v57, 0.0 }
 0x299   :  { %v871_v63 = vmax.f32 %v813_v59, 0.0 }
 0x29a   :  { %v869_v5 = vmax.f32 %v805_v61, 0.0 }
 0x29b   :  { %v891_v6 = vpack.c.bf16 %v871_v63, %v870_v62 }
 0x29c   :  { %v890_v46 = vpack.c.bf16 %v869_v5, %v868_v4 }
 0x29e   :  { %2318 = vmatprep.subr.bf16.mxu1 %v890_v46  ;;  %v2886_v46 = vld [vmem:[#allocation8 + $0x8] sm:$0xff]  }
 0x29f   :  { %2319 = vmatpush3.bf16.msra.mxu1 %v882_v3 }
 0x2a0   :  { %2320 = vmatprep.subr.bf16.mxu1 %v891_v6 }
 0x2a3   :  { %2321 = vmatpush3.bf16.msra.mxu1 %v3371_v2 }
 0x2a4   :  { %v2652_v43 = vpop.f32.mrb[24].mxu1 }
 0x2a5   :  { %v826_v7 = vadd.f32 %v2652_v43, %v3361_v8  ;;  %v817_v9 = vpop.f32.mrb[25].mxu1  ;;  %v2887_v43 = vld [vmem:[#allocation8 + $0x10] sm:$0xff]  }
 0x2a6   :  { %v818_v10 = vadd.f32 %v3361_v8, %v817_v9  ;;  %v2653_v12 = vpop.f32.mrb[26].mxu1 }
 0x2a7   :  { %v829_v13 = vadd.f32 %v2653_v12, %v3361_v8  ;;  %v820_v14 = vpop.f32.mrb[27].mxu1  ;;  %v874_v16 = vmax.f32 %v826_v7, 0.0 }
 0x2a8   :  { %v821_v15 = vadd.f32 %v3361_v8, %v820_v14  ;;  %v872_v11 = vmax.f32 %v818_v10, 0.0 }
 0x2a9   :  { %v875_v21 = vmax.f32 %v829_v13, 0.0 }
 0x2aa   :  { %v873_v25 = vmax.f32 %v821_v15, 0.0 }
 0x2ab   :  { %v893_v3 = vpack.c.bf16 %v875_v21, %v874_v16 }
 0x2ac   :  { %v892_v47 = vpack.c.bf16 %v873_v25, %v872_v11 }
 0x2ae   :  { %2322 = vmatprep.subr.bf16.mxu1 %v892_v47 }
 0x2af   :  { %2323 = vmatpush3.bf16.msra.mxu1 %v3379_v23 }
 0x2b0   :  { %2324 = vmatprep.subr.bf16.mxu1 %v893_v3 }
 0x2b3   :  { %2325 = vmatpush3.bf16.msra.mxu1 %v3377_v22  ;;  %v2885_v22 = vld [vmem:[#allocation8] sm:$0xff]  }
 0x2b4   :  { %v2656_v2 = vpop.f32.mrb[28].mxu1  ;;  %2658 = vmatprep.subr.bf16.mxu0 %v2885_v22 }
 0x2b5   :  { %v842_v50 = vadd.f32 %v2656_v2, %v3361_v8  ;;  %v833_v56 = vpop.f32.mrb[29].mxu1  ;;  %2659 = vmatpush3.bf16.msra.mxu0 %v2885_v22 }
 0x2b6   :  { %v834_v57 = vadd.f32 %v3361_v8, %v833_v56  ;;  %v2657_v58 = vpop.f32.mrb[30].mxu1  ;;  %2660 = vmatprep.subr.bf16.mxu0 %v2886_v46 }
 0x2b7   :  { %v845_v59 = vadd.f32 %v2657_v58, %v3361_v8  ;;  %v836_v60 = vpop.f32.mrb[31].mxu1  ;;  %v878_v62 = vmax.f32 %v842_v50, 0.0 }
 0x2b8   :  { %v837_v61 = vadd.f32 %v3361_v8, %v836_v60  ;;  %v876_v4 = vmax.f32 %v834_v57, 0.0  ;;  %v2888_v8 = vld [vmem:[#allocation8 + $0x18] sm:$0xff]  }
 0x2b9   :  { %v879_v63 = vmax.f32 %v845_v59, 0.0  ;;  %2661 = vmatpush3.bf16.msra.mxu0 %v2886_v46 }
 0x2ba   :  { %v877_v5 = vmax.f32 %v837_v61, 0.0  ;;  %2662 = vmatprep.subr.bf16.mxu0 %v2887_v43 }
 0x2bb   :  { %v895_v23 = vpack.c.bf16 %v879_v63, %v878_v62 }
 0x2bc   :  { %v894_v6 = vpack.c.bf16 %v877_v5, %v876_v4 }
 0x2bd   :  { %2663 = vmatpush3.bf16.msra.mxu0 %v2887_v43 }
 0x2be   :  { %2326 = vmatprep.subr.bf16.mxu1 %v894_v6  ;;  %2664 = vmatprep.subr.bf16.mxu0 %v2888_v8 }
 0x2bf   :  { %2327 = vmatpush3.bf16.msra.mxu1 %v3387_v1 }
 0x2c0   :  { %2328 = vmatprep.subr.bf16.mxu1 %v895_v23 }
 0x2c1   :  { %2665 = vmatpush3.bf16.msra.mxu0 %v2888_v8 }
 0x2c3   :  { %2329 = vmatpush3.bf16.msra.mxu1 %v3385_v0 }
 0x2c6   :  { %929 = vmatmul.mubr.bf16.vlgmr.msra.gmra.mrb[32].mxu1 %v3264_v17  ;;  %v2889_v17 = vld [vmem:[#allocation8 + $0x20] sm:$0xff]  }
 0x2c7   :  { %936 = vmatprep.mubr.bf16.mxu1 %v3266_v18  ;;  %2666 = vmatprep.subr.bf16.mxu0 %v2889_v17  ;;  %v2890_v18 = vld [vmem:[#allocation8 + $0x28] sm:$0xff]  }
 0x2c8   :  { %2667 = vmatpush3.bf16.msra.mxu0 %v2889_v17 }
 0x2c9   :  { %2668 = vmatprep.subr.bf16.mxu0 %v2890_v18 }
 0x2cc   :  { %2669 = vmatpush3.bf16.msra.mxu0 %v2890_v18 }
 0x2ce   :  { %937 = vmatmul.mubr.bf16.gmra.mrb[36].mxu1 %v3270_v19  ;;  %v2891_v19 = vld [vmem:[#allocation8 + $0x30] sm:$0xff]  }
 0x2cf   :  { %944 = vmatprep.mubr.bf16.mxu1 %v3272_v20  ;;  %2670 = vmatprep.subr.bf16.mxu0 %v2891_v19  ;;  %v2892_v20 = vld [vmem:[#allocation8 + $0x38] sm:$0xff]  }
 0x2d0   :  { %2671 = vmatpush3.bf16.msra.mxu0 %v2891_v19 }
 0x2d1   :  { %2672 = vmatprep.subr.bf16.mxu0 %v2892_v20 }
 0x2d4   :  { %2673 = vmatpush3.bf16.msra.mxu0 %v2892_v20 }
 0x2d6   :  { %945 = vmatmul.mubr.bf16.gmra.mrb[40].mxu1 %v3276_v24 }
 0x2d7   :  { %952 = vmatprep.mubr.bf16.mxu1 %v3278_v26 }
 0x2de   :  { %953 = vmatmul.mubr.bf16.gmra.mrb[44].mxu1 %v3282_v27 }
 0x2df   :  { %960 = vmatprep.mubr.bf16.mxu1 %v3284_v28 }
 0x2e6   :  { %961 = vmatmul.mubr.bf16.gmra.mrb[48].mxu1 %v3288_v29 }
 0x2e7   :  { %968 = vmatprep.mubr.bf16.mxu1 %v3290_v30 }
 0x2ee   :  { %969 = vmatmul.mubr.bf16.gmra.mrb[52].mxu1 %v3294_v31 }
 0x2ef   :  { %976 = vmatprep.mubr.bf16.mxu1 %v3296_v32 }
 0x2f6   :  { %977 = vmatmul.mubr.bf16.gmra.mrb[56].mxu1 %v3300_v33 }
 0x2f7   :  { %984 = vmatprep.mubr.bf16.mxu1 %v3302_v34 }
 0x2fe   :  { %985 = vmatmul.mubr.bf16.gmra.mrb[60].mxu1 %v3306_v35 }
 0x2ff   :  { %992 = vmatprep.mubr.bf16.mxu1 %v3308_v36 }
 0x306   :  { %993 = vmatmul.mubr.bf16.gmra.mrb[64].mxu1 %v3312_v37 }
 0x307   :  { %1000 = vmatprep.mubr.bf16.mxu1 %v3314_v38 }
 0x30e   :  { %1001 = vmatmul.mubr.bf16.gmra.mrb[68].mxu1 %v3318_v39 }
 0x30f   :  { %1008 = vmatprep.mubr.bf16.mxu1 %v3320_v40 }
 0x316   :  { %1009 = vmatmul.mubr.bf16.gmra.mrb[72].mxu1 %v3324_v41 }
 0x317   :  { %1016 = vmatprep.mubr.bf16.mxu1 %v3326_v42 }
 0x31e   :  { %1017 = vmatmul.mubr.bf16.gmra.mrb[76].mxu1 %v3330_v44 }
 0x31f   :  { %1024 = vmatprep.mubr.bf16.mxu1 %v3332_v45 }
 0x326   :  { %1025 = vmatmul.mubr.bf16.gmra.mrb[80].mxu1 %v3336_v48 }
 0x327   :  { %1032 = vmatprep.mubr.bf16.mxu1 %v3338_v49 }
 0x32e   :  { %1033 = vmatmul.mubr.bf16.gmra.mrb[84].mxu1 %v3342_v51 }
 0x32f   :  { %1040 = vmatprep.mubr.bf16.mxu1 %v3344_v52 }
 0x336   :  { %1041 = vmatmul.mubr.bf16.gmra.mrb[88].mxu1 %v3348_v53 }
 0x337   :  { %1048 = vmatprep.mubr.bf16.mxu1 %v3350_v54 }
 0x33e   :  { %1049 = vmatmul.mubr.bf16.gmra.mrb[92].mxu1 %v3354_v55 }
 0x399   :  { %v2330_v24 = vpop.f32.mrb[32].mxu1 }
 0x39a   :  { %v2331_v26 = vpop.f32.mrb[33].mxu1 }
 0x39b   :  { %v2332_v27 = vadd.f32 %v2331_v26, %v2330_v24  ;;  %v2333_v28 = vpop.f32.mrb[34].mxu1 }
 0x39c   :  { %v2334_v29 = vpop.f32.mrb[35].mxu1 }
 0x39d   :  { %v2335_v30 = vadd.f32 %v2334_v29, %v2333_v28 }
 0x39f   :  { %v1057_v31 = vpack.c.bf16 %v2335_v30, %v2332_v27 }
 0x3a1   :  { %v2336_v32 = vpop.f32.mrb[36].mxu1  ;;  %2674 = vmatprep.mubr.bf16.mxu0 %v1057_v31 }
 0x3a2   :  { %v2337_v33 = vpop.f32.mrb[37].mxu1 }
 0x3a3   :  { %v2338_v34 = vadd.f32 %v2337_v33, %v2336_v32  ;;  %v2339_v35 = vpop.f32.mrb[38].mxu1 }
 0x3a4   :  { %v2340_v36 = vpop.f32.mrb[39].mxu1 }
 0x3a5   :  { %v2341_v37 = vadd.f32 %v2340_v36, %v2339_v35 }
 0x3a7   :  { %v1058_v38 = vpack.c.bf16 %v2341_v37, %v2338_v34 }
 0x3a9   :  { %v2342_v39 = vpop.f32.mrb[40].mxu1  ;;  %2675 = vmatmul.mubr.bf16.vlgmr.msra.gmra.mrb[64].mxu0 %v1058_v38 }
 0x3aa   :  { %v2343_v40 = vpop.f32.mrb[41].mxu1 }
 0x3ab   :  { %v2344_v41 = vadd.f32 %v2343_v40, %v2342_v39  ;;  %v2345_v42 = vpop.f32.mrb[42].mxu1 }
 0x3ac   :  { %v2346_v44 = vpop.f32.mrb[43].mxu1 }
 0x3ad   :  { %v2347_v45 = vadd.f32 %v2346_v44, %v2345_v42 }
 0x3af   :  { %v1059_v48 = vpack.c.bf16 %v2347_v45, %v2344_v41 }
 0x3b1   :  { %v2348_v49 = vpop.f32.mrb[44].mxu1  ;;  %2678 = vmatprep.mubr.bf16.mxu0 %v1059_v48 }
 0x3b2   :  { %v2349_v51 = vpop.f32.mrb[45].mxu1 }
 0x3b3   :  { %v2350_v52 = vadd.f32 %v2349_v51, %v2348_v49  ;;  %v2351_v53 = vpop.f32.mrb[46].mxu1 }
 0x3b4   :  { %v2352_v54 = vpop.f32.mrb[47].mxu1 }
 0x3b5   :  { %v2353_v55 = vadd.f32 %v2352_v54, %v2351_v53 }
 0x3b7   :  { %v1060_v0 = vpack.c.bf16 %v2353_v55, %v2350_v52 }
 0x3b9   :  { %v2354_v1 = vpop.f32.mrb[48].mxu1  ;;  %2679 = vmatmul.mubr.bf16.gmra.mrb[68].mxu0 %v1060_v0 }
 0x3ba   :  { %v2355_v7 = vpop.f32.mrb[49].mxu1 }
 0x3bb   :  { %v2356_v9 = vadd.f32 %v2355_v7, %v2354_v1  ;;  %v2357_v10 = vpop.f32.mrb[50].mxu1 }
 0x3bc   :  { %v2358_v12 = vpop.f32.mrb[51].mxu1 }
 0x3bd   :  { %v2359_v13 = vadd.f32 %v2358_v12, %v2357_v10 }
 0x3bf   :  { %v1061_v14 = vpack.c.bf16 %v2359_v13, %v2356_v9 }
 0x3c1   :  { %v2360_v15 = vpop.f32.mrb[52].mxu1  ;;  %2682 = vmatprep.mubr.bf16.mxu0 %v1061_v14 }
 0x3c2   :  { %v2361_v16 = vpop.f32.mrb[53].mxu1 }
 0x3c3   :  { %v2362_v21 = vadd.f32 %v2361_v16, %v2360_v15  ;;  %v2363_v11 = vpop.f32.mrb[54].mxu1 }
 0x3c4   :  { %v2364_v25 = vpop.f32.mrb[55].mxu1 }
 0x3c5   :  { %v2365_v3 = vadd.f32 %v2364_v25, %v2363_v11 }
 0x3c7   :  { %v1062_v47 = vpack.c.bf16 %v2365_v3, %v2362_v21 }
 0x3c9   :  { %v2366_v2 = vpop.f32.mrb[56].mxu1  ;;  %2683 = vmatmul.mubr.bf16.gmra.mrb[72].mxu0 %v1062_v47 }
 0x3ca   :  { %v2367_v50 = vpop.f32.mrb[57].mxu1 }
 0x3cb   :  { %v2368_v56 = vadd.f32 %v2367_v50, %v2366_v2  ;;  %v2369_v57 = vpop.f32.mrb[58].mxu1 }
 0x3cc   :  { %v2370_v58 = vpop.f32.mrb[59].mxu1 }
 0x3cd   :  { %v2371_v59 = vadd.f32 %v2370_v58, %v2369_v57 }
 0x3cf   :  { %v1063_v60 = vpack.c.bf16 %v2371_v59, %v2368_v56 }
 0x3d1   :  { %v2372_v61 = vpop.f32.mrb[60].mxu1  ;;  %2686 = vmatprep.mubr.bf16.mxu0 %v1063_v60  ;;  %v2909_v60 = vld [vmem:[#allocation2 + $0x4] ss:$8 sps:$4 sm:$0xff]  }
 0x3d2   :  { %v2373_v62 = vpop.f32.mrb[61].mxu1 }
 0x3d3   :  { %v2374_v63 = vadd.f32 %v2373_v62, %v2372_v61  ;;  %v2375_v4 = vpop.f32.mrb[62].mxu1  ;;  %v3444_v61 = vld [vmem:[%s3587_s5] ss:$0 sm:$0xff] }
 0x3d4   :  { %v2376_v5 = vpop.f32.mrb[63].mxu1 }
 0x3d5   :  { %v2377_v23 = vadd.f32 %v2376_v5, %v2375_v4 }
 0x3d7   :  { %v1064_v6 = vpack.c.bf16 %v2377_v23, %v2374_v63 }
 0x3d9   :  { %v2378_v22 = vpop.f32.mrb[64].mxu1  ;;  %2687 = vmatmul.mubr.bf16.gmra.mrb[76].mxu0 %v1064_v6 }
 0x3da   :  { %v2379_v46 = vpop.f32.mrb[65].mxu1 }
 0x3db   :  { %v2380_v43 = vadd.f32 %v2379_v46, %v2378_v22  ;;  %v2381_v8 = vpop.f32.mrb[66].mxu1 }
 0x3dc   :  { %v2382_v17 = vpop.f32.mrb[67].mxu1 }
 0x3dd   :  { %v2383_v18 = vadd.f32 %v2382_v17, %v2381_v8 }
 0x3df   :  { %v1065_v19 = vpack.c.bf16 %v2383_v18, %v2380_v43 }
 0x3e1   :  { %v2384_v20 = vpop.f32.mrb[68].mxu1  ;;  %2690 = vmatprep.mubr.bf16.mxu0 %v1065_v19 }
 0x3e2   :  { %v2385_v24 = vpop.f32.mrb[69].mxu1 }
 0x3e3   :  { %v2386_v26 = vadd.f32 %v2385_v24, %v2384_v20  ;;  %v2387_v27 = vpop.f32.mrb[70].mxu1 }
 0x3e4   :  { %v2388_v28 = vpop.f32.mrb[71].mxu1 }
 0x3e5   :  { %v2389_v29 = vadd.f32 %v2388_v28, %v2387_v27 }
 0x3e7   :  { %v1066_v30 = vpack.c.bf16 %v2389_v29, %v2386_v26 }
 0x3e9   :  { %v2390_v31 = vpop.f32.mrb[72].mxu1  ;;  %2691 = vmatmul.mubr.bf16.gmra.mrb[80].mxu0 %v1066_v30 }
 0x3ea   :  { %v2391_v32 = vpop.f32.mrb[73].mxu1 }
 0x3eb   :  { %v2392_v33 = vadd.f32 %v2391_v32, %v2390_v31  ;;  %v2393_v34 = vpop.f32.mrb[74].mxu1 }
 0x3ec   :  { %v2394_v35 = vpop.f32.mrb[75].mxu1 }
 0x3ed   :  { %v2395_v36 = vadd.f32 %v2394_v35, %v2393_v34 }
 0x3ef   :  { %v1067_v37 = vpack.c.bf16 %v2395_v36, %v2392_v33 }
 0x3f1   :  { %v2396_v38 = vpop.f32.mrb[76].mxu1  ;;  %2694 = vmatprep.mubr.bf16.mxu0 %v1067_v37 }
 0x3f2   :  { %v2397_v39 = vpop.f32.mrb[77].mxu1 }
 0x3f3   :  { %v2398_v40 = vadd.f32 %v2397_v39, %v2396_v38  ;;  %v2399_v41 = vpop.f32.mrb[78].mxu1 }
 0x3f4   :  { %v2400_v42 = vpop.f32.mrb[79].mxu1 }
 0x3f5   :  { %v2401_v44 = vadd.f32 %v2400_v42, %v2399_v41 }
 0x3f7   :  { %v1068_v45 = vpack.c.bf16 %v2401_v44, %v2398_v40 }
 0x3f9   :  { %v2402_v48 = vpop.f32.mrb[80].mxu1  ;;  %2695 = vmatmul.mubr.bf16.gmra.mrb[84].mxu0 %v1068_v45 }
 0x3fa   :  { %v2403_v49 = vpop.f32.mrb[81].mxu1 }
 0x3fb   :  { %v2404_v51 = vadd.f32 %v2403_v49, %v2402_v48  ;;  %v2405_v52 = vpop.f32.mrb[82].mxu1 }
 0x3fc   :  { %v2406_v53 = vpop.f32.mrb[83].mxu1 }
 0x3fd   :  { %v2407_v54 = vadd.f32 %v2406_v53, %v2405_v52 }
 0x3ff   :  { %v1069_v55 = vpack.c.bf16 %v2407_v54, %v2404_v51 }
 0x401   :  { %v2408_v0 = vpop.f32.mrb[84].mxu1  ;;  %2698 = vmatprep.mubr.bf16.mxu0 %v1069_v55 }
 0x402   :  { %v2409_v1 = vpop.f32.mrb[85].mxu1 }
 0x403   :  { %v2410_v7 = vadd.f32 %v2409_v1, %v2408_v0  ;;  %v2411_v9 = vpop.f32.mrb[86].mxu1 }
 0x404   :  { %v2412_v10 = vpop.f32.mrb[87].mxu1 }
 0x405   :  { %v2413_v12 = vadd.f32 %v2412_v10, %v2411_v9 }
 0x407   :  { %v1070_v13 = vpack.c.bf16 %v2413_v12, %v2410_v7 }
 0x409   :  { %v2414_v14 = vpop.f32.mrb[88].mxu1  ;;  %2699 = vmatmul.mubr.bf16.gmra.mrb[88].mxu0 %v1070_v13 }
 0x40a   :  { %v2415_v15 = vpop.f32.mrb[89].mxu1 }
 0x40b   :  { %v2416_v16 = vadd.f32 %v2415_v15, %v2414_v14  ;;  %v2417_v21 = vpop.f32.mrb[90].mxu1 }
 0x40c   :  { %v2418_v11 = vpop.f32.mrb[91].mxu1 }
 0x40d   :  { %v2419_v25 = vadd.f32 %v2418_v11, %v2417_v21 }
 0x40f   :  { %v1071_v3 = vpack.c.bf16 %v2419_v25, %v2416_v16 }
 0x411   :  { %v2420_v47 = vpop.f32.mrb[92].mxu1  ;;  %2702 = vmatprep.mubr.bf16.mxu0 %v1071_v3 }
 0x412   :  { %v2421_v2 = vpop.f32.mrb[93].mxu1 }
 0x413   :  { %v2422_v50 = vadd.f32 %v2421_v2, %v2420_v47  ;;  %v2423_v56 = vpop.f32.mrb[94].mxu1 }
 0x414   :  { %v2424_v57 = vpop.f32.mrb[95].mxu1 }
 0x415   :  { %v2425_v58 = vadd.f32 %v2424_v57, %v2423_v56 }
 0x417   :  { %v1072_v59 = vpack.c.bf16 %v2425_v58, %v2422_v50 }
 0x419   :  { %2703 = vmatmul.mubr.bf16.gmra.mrb[92].mxu0 %v1072_v59 }
 0x41a   :  { %1385 = vmatprep.mubr.bf16.mxu0 %v2909_v60 }
 0x47c   :  { %v2676_v62 = vpop.f32.mrb[64].mxu0 }
 0x47d   :  { %v1187_v63 = vadd.f32 %v2676_v62, %v3444_v61  ;;  %v1178_v4 = vpop.f32.mrb[65].mxu0 }
 0x47e   :  { %v1179_v5 = vadd.f32 %v3444_v61, %v1178_v4  ;;  %v2677_v23 = vpop.f32.mrb[66].mxu0 }
 0x47f   :  { %v1190_v6 = vadd.f32 %v2677_v23, %v3444_v61  ;;  %v1181_v22 = vpop.f32.mrb[67].mxu0  ;;  %v1307_v43 = vmax.f32 %v1187_v63, 0.0 }
 0x480   :  { %v1182_v46 = vadd.f32 %v3444_v61, %v1181_v22  ;;  %v1305_v17 = vmax.f32 %v1179_v5, 0.0 }
 0x481   :  { %v1308_v8 = vmax.f32 %v1190_v6, 0.0 }
 0x482   :  { %v1306_v18 = vmax.f32 %v1182_v46, 0.0 }
 0x483   :  { %v1338_v19 = vpack.c.bf16 %v1308_v8, %v1307_v43 }
 0x484   :  { %v1337_v20 = vpack.c.bf16 %v1306_v18, %v1305_v17 }
 0x48c   :  { %v2680_v24 = vpop.f32.mrb[68].mxu0 }
 0x48d   :  { %v1203_v26 = vadd.f32 %v2680_v24, %v3444_v61  ;;  %v1194_v27 = vpop.f32.mrb[69].mxu0 }
 0x48e   :  { %v1195_v28 = vadd.f32 %v3444_v61, %v1194_v27  ;;  %v2681_v29 = vpop.f32.mrb[70].mxu0 }
 0x48f   :  { %v1206_v30 = vadd.f32 %v2681_v29, %v3444_v61  ;;  %v1197_v31 = vpop.f32.mrb[71].mxu0  ;;  %v1311_v33 = vmax.f32 %v1203_v26, 0.0 }
 0x490   :  { %v1198_v32 = vadd.f32 %v3444_v61, %v1197_v31  ;;  %v1309_v35 = vmax.f32 %v1195_v28, 0.0 }
 0x491   :  { %v1312_v34 = vmax.f32 %v1206_v30, 0.0 }
 0x492   :  { %v1310_v36 = vmax.f32 %v1198_v32, 0.0 }
 0x493   :  { %v3454_v37 = vpack.c.bf16 %v1312_v34, %v1311_v33 }
 0x494   :  { %v1339_v38 = vpack.c.bf16 %v1310_v36, %v1309_v35 }
 0x49c   :  { %v2684_v39 = vpop.f32.mrb[72].mxu0 }
 0x49d   :  { %v1219_v40 = vadd.f32 %v2684_v39, %v3444_v61  ;;  %v1210_v41 = vpop.f32.mrb[73].mxu0 }
 0x49e   :  { %v1211_v42 = vadd.f32 %v3444_v61, %v1210_v41  ;;  %v2685_v44 = vpop.f32.mrb[74].mxu0 }
 0x49f   :  { %v1222_v45 = vadd.f32 %v2685_v44, %v3444_v61  ;;  %v1213_v48 = vpop.f32.mrb[75].mxu0  ;;  %v1315_v51 = vmax.f32 %v1219_v40, 0.0 }
 0x4a0   :  { %v1214_v49 = vadd.f32 %v3444_v61, %v1213_v48  ;;  %v1313_v53 = vmax.f32 %v1211_v42, 0.0 }
 0x4a1   :  { %v1316_v52 = vmax.f32 %v1222_v45, 0.0 }
 0x4a2   :  { %v1314_v54 = vmax.f32 %v1214_v49, 0.0 }
 0x4a3   :  { %v3460_v55 = vpack.c.bf16 %v1316_v52, %v1315_v51 }
 0x4a4   :  { %v3462_v0 = vpack.c.bf16 %v1314_v54, %v1313_v53 }
 0x4ac   :  { %v2688_v1 = vpop.f32.mrb[76].mxu0 }
 0x4ad   :  { %v1235_v7 = vadd.f32 %v2688_v1, %v3444_v61  ;;  %v1226_v9 = vpop.f32.mrb[77].mxu0 }
 0x4ae   :  { %v1227_v10 = vadd.f32 %v3444_v61, %v1226_v9  ;;  %v2689_v12 = vpop.f32.mrb[78].mxu0 }
 0x4af   :  { %v1238_v13 = vadd.f32 %v2689_v12, %v3444_v61  ;;  %v1229_v14 = vpop.f32.mrb[79].mxu0  ;;  %v1319_v16 = vmax.f32 %v1235_v7, 0.0 }
 0x4b0   :  { %v1230_v15 = vadd.f32 %v3444_v61, %v1229_v14  ;;  %v1317_v11 = vmax.f32 %v1227_v10, 0.0 }
 0x4b1   :  { %v1320_v21 = vmax.f32 %v1238_v13, 0.0 }
 0x4b2   :  { %v1318_v25 = vmax.f32 %v1230_v15, 0.0 }
 0x4b3   :  { %v3468_v3 = vpack.c.bf16 %v1320_v21, %v1319_v16  ;;  %v2894_v16 = vld [vmem:[#allocation10 + $0x8] sm:$0xff]   ;;  %v2895_v21 = vld [vmem:[#allocation10 + $0x10] sm:$0xff]  }
 0x4b4   :  { %v3470_v47 = vpack.c.bf16 %v1318_v25, %v1317_v11  ;;  %v2896_v11 = vld [vmem:[#allocation10 + $0x18] sm:$0xff]  }
 0x4b5   :  { %v2911_v25 = vld [vmem:[#allocation2 + $0x14] ss:$8 sps:$4 sm:$0xff]  }
 0x4bc   :  { %v2692_v2 = vpop.f32.mrb[80].mxu0 }
 0x4bd   :  { %v1251_v50 = vadd.f32 %v2692_v2, %v3444_v61  ;;  %v1242_v56 = vpop.f32.mrb[81].mxu0  ;;  %v2897_v2 = vld [vmem:[#allocation10 + $0x20] sm:$0xff]  }
 0x4be   :  { %v1243_v57 = vadd.f32 %v3444_v61, %v1242_v56  ;;  %v2693_v58 = vpop.f32.mrb[82].mxu0  ;;  %v2914_v56 = vld [vmem:[#allocation2 + $0x20] ss:$8 sps:$4 sm:$0xff]  }
 0x4bf   :  { %v1254_v59 = vadd.f32 %v2693_v58, %v3444_v61  ;;  %v1245_v60 = vpop.f32.mrb[83].mxu0  ;;  %v1323_v63 = vmax.f32 %v1251_v50, 0.0  ;;  %v2912_v50 = vld [vmem:[#allocation2 + $0x10] ss:$8 sps:$4 sm:$0xff]   ;;  %v2917_v58 = vld [vmem:[#allocation2 + $0x44] ss:$8 sps:$4 sm:$0xff]  }
 0x4c0   :  { %v1246_v62 = vadd.f32 %v3444_v61, %v1245_v60  ;;  %v1321_v5 = vmax.f32 %v1243_v57, 0.0  ;;  %v2916_v57 = vld [vmem:[#allocation2 + $0x30] ss:$8 sps:$4 sm:$0xff]   ;;  %v2919_v60 = vld [vmem:[#allocation2 + $0x54] ss:$8 sps:$4 sm:$0xff]  }
 0x4c1   :  { %v1324_v4 = vmax.f32 %v1254_v59, 0.0  ;;  %v2918_v59 = vld [vmem:[#allocation2 + $0x40] ss:$8 sps:$4 sm:$0xff]  }
 0x4c2   :  { %v1322_v23 = vmax.f32 %v1246_v62, 0.0  ;;  %v2920_v62 = vld [vmem:[#allocation2 + $0x50] ss:$8 sps:$4 sm:$0xff]  }
 0x4c3   :  { %v1346_v6 = vpack.c.bf16 %v1324_v4, %v1323_v63  ;;  %v2921_v63 = vld [vmem:[#allocation2 + $0x64] ss:$8 sps:$4 sm:$0xff]   ;;  %v2922_v4 = vld [vmem:[#allocation2 + $0x60] ss:$8 sps:$4 sm:$0xff]  }
 0x4c4   :  { %v1345_v22 = vpack.c.bf16 %v1322_v23, %v1321_v5  ;;  %v2923_v5 = vld [vmem:[#allocation2 + $0x74] ss:$8 sps:$4 sm:$0xff]   ;;  %v2924_v23 = vld [vmem:[#allocation2 + $0x70] ss:$8 sps:$4 sm:$0xff]  }
 0x4c6   :  { %2450 = vmatprep.subr.bf16.mxu0 %v1345_v22  ;;  %v2926_v22 = vld [vmem:[#allocation2 + $0x80] ss:$8 sps:$4 sm:$0xff]  }
 0x4c7   :  { %2451 = vmatpush3.bf16.msra.mxu0 %v1337_v20 }
 0x4c8   :  { %2452 = vmatprep.subr.bf16.mxu0 %v1346_v6  ;;  %v2925_v6 = vld [vmem:[#allocation2 + $0x84] ss:$8 sps:$4 sm:$0xff]  }
 0x4cb   :  { %2453 = vmatpush3.bf16.msra.mxu0 %v1338_v19 }
 0x4cc   :  { %v2696_v46 = vpop.f32.mrb[84].mxu0 }
 0x4cd   :  { %v1267_v43 = vadd.f32 %v2696_v46, %v3444_v61  ;;  %v1258_v8 = vpop.f32.mrb[85].mxu0  ;;  %v2927_v46 = vld [vmem:[#allocation2 + $0x94] ss:$8 sps:$4 sm:$0xff]  }
 0x4ce   :  { %v1259_v17 = vadd.f32 %v3444_v61, %v1258_v8  ;;  %v2697_v18 = vpop.f32.mrb[86].mxu0  ;;  %v2929_v8 = vld [vmem:[#allocation2 + $0xa4] ss:$8 sps:$4 sm:$0xff]  }
 0x4cf   :  { %v1270_v24 = vadd.f32 %v2697_v18, %v3444_v61  ;;  %v1261_v26 = vpop.f32.mrb[87].mxu0  ;;  %v1327_v28 = vmax.f32 %v1267_v43, 0.0  ;;  %v2928_v43 = vld [vmem:[#allocation2 + $0x90] ss:$8 sps:$4 sm:$0xff]   ;;  %v2931_v18 = vld [vmem:[#allocation2 + $0xb4] ss:$8 sps:$4 sm:$0xff]  }
 0x4d0   :  { %v1262_v27 = vadd.f32 %v3444_v61, %v1261_v26  ;;  %v1325_v30 = vmax.f32 %v1259_v17, 0.0  ;;  %v2930_v17 = vld [vmem:[#allocation2 + $0xa0] ss:$8 sps:$4 sm:$0xff]   ;;  %v2932_v26 = vld [vmem:[#allocation2 + $0xb0] ss:$8 sps:$4 sm:$0xff]  }
 0x4d1   :  { %v1328_v29 = vmax.f32 %v1270_v24, 0.0  ;;  %v2898_v24 = vld [vmem:[#allocation10 + $0x28] sm:$0xff]  }
 0x4d2   :  { %v1326_v31 = vmax.f32 %v1262_v27, 0.0  ;;  %v2933_v27 = vld [vmem:[#allocation2 + $0xc4] ss:$8 sps:$4 sm:$0xff]  }
 0x4d3   :  { %v1348_v32 = vpack.c.bf16 %v1328_v29, %v1327_v28  ;;  %v2899_v28 = vld [vmem:[#allocation10 + $0x30] sm:$0xff]   ;;  %v2900_v29 = vld [vmem:[#allocation10 + $0x38] sm:$0xff]  }
 0x4d4   :  { %v1347_v20 = vpack.c.bf16 %v1326_v31, %v1325_v30  ;;  %v2934_v30 = vld [vmem:[#allocation2 + $0xc0] ss:$8 sps:$4 sm:$0xff]   ;;  %v2935_v31 = vld [vmem:[#allocation2 + $0xd4] ss:$8 sps:$4 sm:$0xff]  }
 0x4d6   :  { %2454 = vmatprep.subr.bf16.mxu0 %v1347_v20  ;;  %v2937_v20 = vld [vmem:[#allocation2 + $0xe4] ss:$8 sps:$4 sm:$0xff]  }
 0x4d7   :  { %2455 = vmatpush3.bf16.msra.mxu0 %v1339_v38 }
 0x4d8   :  { %2456 = vmatprep.subr.bf16.mxu0 %v1348_v32  ;;  %v2936_v32 = vld [vmem:[#allocation2 + $0xd0] ss:$8 sps:$4 sm:$0xff]  }
 0x4db   :  { %2457 = vmatpush3.bf16.msra.mxu0 %v3454_v37 }
 0x4dc   :  { %v2700_v19 = vpop.f32.mrb[88].mxu0 }
 0x4dd   :  { %v1283_v33 = vadd.f32 %v2700_v19, %v3444_v61  ;;  %v1274_v34 = vpop.f32.mrb[89].mxu0  ;;  %v2938_v19 = vld [vmem:[#allocation2 + $0xe0] ss:$8 sps:$4 sm:$0xff]  }
 0x4de   :  { %v1275_v35 = vadd.f32 %v3444_v61, %v1274_v34  ;;  %v2701_v36 = vpop.f32.mrb[90].mxu0  ;;  %v2940_v34 = vld [vmem:[#allocation2 + $0xf0] ss:$8 sps:$4 sm:$0xff]  }
 0x4df   :  { %v1286_v39 = vadd.f32 %v2701_v36, %v3444_v61  ;;  %v1277_v40 = vpop.f32.mrb[91].mxu0  ;;  %v1331_v42 = vmax.f32 %v1283_v33, 0.0  ;;  %v2939_v33 = vld [vmem:[#allocation2 + $0xf4] ss:$8 sps:$4 sm:$0xff]   ;;  %v2901_v36 = vld [vmem:[#allocation11] sm:$0xff]  }
 0x4e0   :  { %v1278_v41 = vadd.f32 %v3444_v61, %v1277_v40  ;;  %v1329_v45 = vmax.f32 %v1275_v35, 0.0 }
 0x4e1   :  { %v1332_v44 = vmax.f32 %v1286_v39, 0.0 }
 0x4e2   :  { %v1330_v48 = vmax.f32 %v1278_v41, 0.0 }
 0x4e3   :  { %v1350_v38 = vpack.c.bf16 %v1332_v44, %v1331_v42 }
 0x4e4   :  { %v1349_v49 = vpack.c.bf16 %v1330_v48, %v1329_v45 }
 0x4e6   :  { %2458 = vmatprep.subr.bf16.mxu0 %v1349_v49 }
 0x4e7   :  { %2459 = vmatpush3.bf16.msra.mxu0 %v3462_v0 }
 0x4e8   :  { %2460 = vmatprep.subr.bf16.mxu0 %v1350_v38 }
 0x4eb   :  { %2461 = vmatpush3.bf16.msra.mxu0 %v3460_v55  ;;  %v2893_v55 = vld [vmem:[#allocation10] sm:$0xff]  }
 0x4ec   :  { %v2704_v37 = vpop.f32.mrb[92].mxu0  ;;  %2706 = vmatprep.subr.bf16.mxu1 %v2893_v55 }
 0x4ed   :  { %v1299_v51 = vadd.f32 %v2704_v37, %v3444_v61  ;;  %v1290_v52 = vpop.f32.mrb[93].mxu0  ;;  %2707 = vmatpush3.bf16.msra.mxu1 %v2893_v55 }
 0x4ee   :  { %v1291_v53 = vadd.f32 %v3444_v61, %v1290_v52  ;;  %v2705_v54 = vpop.f32.mrb[94].mxu0  ;;  %2708 = vmatprep.subr.bf16.mxu1 %v2894_v16 }
 0x4ef   :  { %v1302_v1 = vadd.f32 %v2705_v54, %v3444_v61  ;;  %v1293_v7 = vpop.f32.mrb[95].mxu0  ;;  %v1335_v10 = vmax.f32 %v1299_v51, 0.0  ;;  %v2902_v54 = vld [vmem:[#allocation11 + $0x8] sm:$0xff]  }
 0x4f0   :  { %v1294_v9 = vadd.f32 %v3444_v61, %v1293_v7  ;;  %v1333_v13 = vmax.f32 %v1291_v53, 0.0  ;;  %v2910_v61 = vld [vmem:[#allocation2] ss:$8 sps:$4 sm:$0xff]  }
 0x4f1   :  { %v1336_v12 = vmax.f32 %v1302_v1, 0.0  ;;  %2709 = vmatpush3.bf16.msra.mxu1 %v2894_v16 }
 0x4f2   :  { %v1334_v14 = vmax.f32 %v1294_v9, 0.0  ;;  %2710 = vmatprep.subr.bf16.mxu1 %v2895_v21 }
 0x4f3   :  { %v1352_v0 = vpack.c.bf16 %v1336_v12, %v1335_v10  ;;  %v2903_v12 = vld [vmem:[#allocation11 + $0x10] sm:$0xff]  }
 0x4f4   :  { %v1351_v15 = vpack.c.bf16 %v1334_v14, %v1333_v13 }
 0x4f5   :  { %2711 = vmatpush3.bf16.msra.mxu1 %v2895_v21 }
 0x4f6   :  { %2462 = vmatprep.subr.bf16.mxu0 %v1351_v15  ;;  %2712 = vmatprep.subr.bf16.mxu1 %v2896_v11  ;;  %v2904_v15 = vld [vmem:[#allocation11 + $0x18] sm:$0xff]  }
 0x4f7   :  { %2463 = vmatpush3.bf16.msra.mxu0 %v3470_v47  ;;  %v2913_v47 = vld [vmem:[#allocation2 + $0x24] ss:$8 sps:$4 sm:$0xff]  }
 0x4f8   :  { %2464 = vmatprep.subr.bf16.mxu0 %v1352_v0 }
 0x4f9   :  { %2713 = vmatpush3.bf16.msra.mxu1 %v2896_v11  ;;  %v2905_v11 = vld [vmem:[#allocation11 + $0x20] sm:$0xff]  }
 0x4fa   :  { %2714 = vmatprep.subr.bf16.mxu1 %v2897_v2 }
 0x4fb   :  { %2465 = vmatpush3.bf16.msra.mxu0 %v3468_v3  ;;  %v2915_v3 = vld [vmem:[#allocation2 + $0x34] ss:$8 sps:$4 sm:$0xff]  }
 0x4fd   :  { %2715 = vmatpush3.bf16.msra.mxu1 %v2897_v2 }
 0x4fe   :  { %1386 = vmatmul.mubr.bf16.vlgmr.msra.gmra.mrb[96].mxu0 %v2910_v61  ;;  %2716 = vmatprep.subr.bf16.mxu1 %v2898_v24 }
 0x4ff   :  { %1393 = vmatprep.mubr.bf16.mxu0 %v2911_v25 }
 0x501   :  { %2717 = vmatpush3.bf16.msra.mxu1 %v2898_v24 }
 0x502   :  { %2718 = vmatprep.subr.bf16.mxu1 %v2899_v28 }
 0x505   :  { %2719 = vmatpush3.bf16.msra.mxu1 %v2899_v28 }
 0x506   :  { %1394 = vmatmul.mubr.bf16.gmra.mrb[100].mxu0 %v2912_v50  ;;  %2720 = vmatprep.subr.bf16.mxu1 %v2900_v29 }
 0x507   :  { %1401 = vmatprep.mubr.bf16.mxu0 %v2913_v47  ;;  %v2906_v47 = vld [vmem:[#allocation11 + $0x28] sm:$0xff]  }
 0x509   :  { %2721 = vmatpush3.bf16.msra.mxu1 %v2900_v29 }
 0x50a   :  { %2754 = vmatprep.subr.bf16.mxu1 %v2901_v36 }
 0x50e   :  { %1402 = vmatmul.mubr.bf16.gmra.mrb[104].mxu0 %v2914_v56 }
 0x50f   :  { %1409 = vmatprep.mubr.bf16.mxu0 %v2915_v3 }
 0x516   :  { %1410 = vmatmul.mubr.bf16.gmra.mrb[108].mxu0 %v2916_v57 }
 0x517   :  { %1417 = vmatprep.mubr.bf16.mxu0 %v2917_v58 }
 0x51e   :  { %1418 = vmatmul.mubr.bf16.gmra.mrb[112].mxu0 %v2918_v59 }
 0x51f   :  { %1425 = vmatprep.mubr.bf16.mxu0 %v2919_v60 }
 0x526   :  { %1426 = vmatmul.mubr.bf16.gmra.mrb[116].mxu0 %v2920_v62 }
 0x527   :  { %1433 = vmatprep.mubr.bf16.mxu0 %v2921_v63 }
 0x52e   :  { %1434 = vmatmul.mubr.bf16.gmra.mrb[120].mxu0 %v2922_v4 }
 0x52f   :  { %1441 = vmatprep.mubr.bf16.mxu0 %v2923_v5 }
 0x536   :  { %1442 = vmatmul.mubr.bf16.gmra.mrb[124].mxu0 %v2924_v23 }
 0x537   :  { %1449 = vmatprep.mubr.bf16.mxu0 %v2925_v6 }
 0x53e   :  { %1450 = vmatmul.mubr.bf16.gmra.mrb[128].mxu0 %v2926_v22 }
 0x53f   :  { %1457 = vmatprep.mubr.bf16.mxu0 %v2927_v46 }
 0x546   :  { %1458 = vmatmul.mubr.bf16.gmra.mrb[132].mxu0 %v2928_v43 }
 0x547   :  { %1465 = vmatprep.mubr.bf16.mxu0 %v2929_v8 }
 0x54e   :  { %1466 = vmatmul.mubr.bf16.gmra.mrb[136].mxu0 %v2930_v17 }
 0x54f   :  { %1473 = vmatprep.mubr.bf16.mxu0 %v2931_v18 }
 0x556   :  { %1474 = vmatmul.mubr.bf16.gmra.mrb[140].mxu0 %v2932_v26 }
 0x557   :  { %1481 = vmatprep.mubr.bf16.mxu0 %v2933_v27 }
 0x55e   :  { %1482 = vmatmul.mubr.bf16.gmra.mrb[144].mxu0 %v2934_v30 }
 0x55f   :  { %1489 = vmatprep.mubr.bf16.mxu0 %v2935_v31 }
 0x566   :  { %1490 = vmatmul.mubr.bf16.gmra.mrb[148].mxu0 %v2936_v32 }
 0x567   :  { %1497 = vmatprep.mubr.bf16.mxu0 %v2937_v20 }
 0x56e   :  { %1498 = vmatmul.mubr.bf16.gmra.mrb[152].mxu0 %v2938_v19 }
 0x56f   :  { %1505 = vmatprep.mubr.bf16.mxu0 %v2939_v33 }
 0x576   :  { %1506 = vmatmul.mubr.bf16.gmra.mrb[156].mxu0 %v2940_v34 }
 0x5d1   :  { %v2466_v35 = vpop.f32.mrb[96].mxu0 }
 0x5d2   :  { %v2467_v39 = vpop.f32.mrb[97].mxu0 }
 0x5d3   :  { %v2468_v40 = vadd.f32 %v2467_v39, %v2466_v35  ;;  %v2469_v41 = vpop.f32.mrb[98].mxu0 }
 0x5d4   :  { %v2470_v42 = vpop.f32.mrb[99].mxu0 }
 0x5d5   :  { %v2471_v44 = vadd.f32 %v2470_v42, %v2469_v41 }
 0x5d7   :  { %v1514_v45 = vpack.c.bf16 %v2471_v44, %v2468_v40 }
 0x5d9   :  { %v2472_v48 = vpop.f32.mrb[100].mxu0  ;;  %2722 = vmatprep.mubr.bf16.mxu1 %v1514_v45 }
 0x5da   :  { %v2473_v38 = vpop.f32.mrb[101].mxu0 }
 0x5db   :  { %v2474_v49 = vadd.f32 %v2473_v38, %v2472_v48  ;;  %v2475_v37 = vpop.f32.mrb[102].mxu0 }
 0x5dc   :  { %v2476_v51 = vpop.f32.mrb[103].mxu0 }
 0x5dd   :  { %v2477_v52 = vadd.f32 %v2476_v51, %v2475_v37 }
 0x5df   :  { %v1515_v53 = vpack.c.bf16 %v2477_v52, %v2474_v49 }
 0x5e1   :  { %2723 = vmatmul.mubr.bf16.vlgmr.msra.gmra.mrb[96].mxu1 %v1515_v53  ;;  %v2478_v1 = vpop.f32.mrb[104].mxu0 }
 0x5e2   :  { %v2479_v7 = vpop.f32.mrb[105].mxu0  ;;  %2755 = vmatpush3.bf16.msra.mxu1 %v2901_v36 }
 0x5e3   :  { %v2480_v9 = vadd.f32 %v2479_v7, %v2478_v1  ;;  %v2481_v10 = vpop.f32.mrb[106].mxu0  ;;  %2756 = vmatprep.subr.bf16.mxu1 %v2902_v54 }
 0x5e4   :  { %v2482_v13 = vpop.f32.mrb[107].mxu0 }
 0x5e5   :  { %v2483_v14 = vadd.f32 %v2482_v13, %v2481_v10 }
 0x5e6   :  { %2757 = vmatpush3.bf16.msra.mxu1 %v2902_v54 }
 0x5e7   :  { %v1516_v0 = vpack.c.bf16 %v2483_v14, %v2480_v9  ;;  %2758 = vmatprep.subr.bf16.mxu1 %v2903_v12 }
 0x5e9   :  { %v2484_v55 = vpop.f32.mrb[108].mxu0  ;;  %2726 = vmatprep.mubr.bf16.mxu1 %v1516_v0 }
 0x5ea   :  { %v2485_v16 = vpop.f32.mrb[109].mxu0  ;;  %2759 = vmatpush3.bf16.msra.mxu1 %v2903_v12 }
 0x5eb   :  { %v2486_v21 = vadd.f32 %v2485_v16, %v2484_v55  ;;  %v2487_v61 = vpop.f32.mrb[110].mxu0  ;;  %2760 = vmatprep.subr.bf16.mxu1 %v2904_v15 }
 0x5ec   :  { %v2488_v25 = vpop.f32.mrb[111].mxu0 }
 0x5ed   :  { %v2489_v2 = vadd.f32 %v2488_v25, %v2487_v61 }
 0x5ee   :  { %2761 = vmatpush3.bf16.msra.mxu1 %v2904_v15 }
 0x5ef   :  { %v1517_v50 = vpack.c.bf16 %v2489_v2, %v2486_v21  ;;  %2762 = vmatprep.subr.bf16.mxu1 %v2905_v11 }
 0x5f1   :  { %2727 = vmatmul.mubr.bf16.gmra.mrb[100].mxu1 %v1517_v50  ;;  %v2490_v56 = vpop.f32.mrb[112].mxu0  ;;  %v2907_v50 = vld [vmem:[#allocation11 + $0x30] sm:$0xff]  }
 0x5f2   :  { %v2491_v3 = vpop.f32.mrb[113].mxu0  ;;  %2763 = vmatpush3.bf16.msra.mxu1 %v2905_v11 }
 0x5f3   :  { %v2492_v57 = vadd.f32 %v2491_v3, %v2490_v56  ;;  %v2493_v58 = vpop.f32.mrb[114].mxu0  ;;  %2764 = vmatprep.subr.bf16.mxu1 %v2906_v47  ;;  %v2908_v3 = vld [vmem:[#allocation11 + $0x38] sm:$0xff]  }
 0x5f4   :  { %v2494_v59 = vpop.f32.mrb[115].mxu0 }
 0x5f5   :  { %v2495_v60 = vadd.f32 %v2494_v59, %v2493_v58 }
 0x5f6   :  { %2765 = vmatpush3.bf16.msra.mxu1 %v2906_v47 }
 0x5f7   :  { %v1518_v62 = vpack.c.bf16 %v2495_v60, %v2492_v57  ;;  %2766 = vmatprep.subr.bf16.mxu1 %v2907_v50 }
 0x5f9   :  { %v2496_v63 = vpop.f32.mrb[116].mxu0  ;;  %2730 = vmatprep.mubr.bf16.mxu1 %v1518_v62 }
 0x5fa   :  { %v2497_v4 = vpop.f32.mrb[117].mxu0  ;;  %2767 = vmatpush3.bf16.msra.mxu1 %v2907_v50 }
 0x5fb   :  { %v2498_v5 = vadd.f32 %v2497_v4, %v2496_v63  ;;  %v2499_v23 = vpop.f32.mrb[118].mxu0  ;;  %2768 = vmatprep.subr.bf16.mxu1 %v2908_v3 }
 0x5fc   :  { %v2500_v6 = vpop.f32.mrb[119].mxu0 }
 0x5fd   :  { %v2501_v22 = vadd.f32 %v2500_v6, %v2499_v23 }
 0x5fe   :  { %2769 = vmatpush3.bf16.msra.mxu1 %v2908_v3 }
 0x5ff   :  { %v1519_v46 = vpack.c.bf16 %v2501_v22, %v2498_v5 }
 0x601   :  { %2731 = vmatmul.mubr.bf16.gmra.mrb[104].mxu1 %v1519_v46  ;;  %v2502_v43 = vpop.f32.mrb[120].mxu0 }
 0x602   :  { %v2503_v8 = vpop.f32.mrb[121].mxu0 }
 0x603   :  { %v2504_v17 = vadd.f32 %v2503_v8, %v2502_v43  ;;  %v2505_v18 = vpop.f32.mrb[122].mxu0 }
 0x604   :  { %v2506_v24 = vpop.f32.mrb[123].mxu0 }
 0x605   :  { %v2507_v26 = vadd.f32 %v2506_v24, %v2505_v18 }
 0x607   :  { %v1520_v27 = vpack.c.bf16 %v2507_v26, %v2504_v17 }
 0x609   :  { %v2508_v28 = vpop.f32.mrb[124].mxu0  ;;  %2734 = vmatprep.mubr.bf16.mxu1 %v1520_v27 }
 0x60a   :  { %v2509_v29 = vpop.f32.mrb[125].mxu0 }
 0x60b   :  { %v2510_v30 = vadd.f32 %v2509_v29, %v2508_v28  ;;  %v2511_v31 = vpop.f32.mrb[126].mxu0  ;;  %v3496_v29 = vld [vmem:[%s3589_s7] ss:$0 sm:$0xff] }
 0x60c   :  { %v2512_v32 = vpop.f32.mrb[127].mxu0 }
 0x60d   :  { %v2513_v20 = vadd.f32 %v2512_v32, %v2511_v31 }
 0x60f   :  { %v1521_v19 = vpack.c.bf16 %v2513_v20, %v2510_v30 }
 0x611   :  { %2735 = vmatmul.mubr.bf16.gmra.mrb[108].mxu1 %v1521_v19  ;;  %v2514_v33 = vpop.f32.mrb[128].mxu0 }
 0x612   :  { %v2515_v34 = vpop.f32.mrb[129].mxu0 }
 0x613   :  { %v2516_v35 = vadd.f32 %v2515_v34, %v2514_v33  ;;  %v2517_v36 = vpop.f32.mrb[130].mxu0 }
 0x614   :  { %v2518_v39 = vpop.f32.mrb[131].mxu0 }
 0x615   :  { %v2519_v40 = vadd.f32 %v2518_v39, %v2517_v36 }
 0x617   :  { %v1522_v41 = vpack.c.bf16 %v2519_v40, %v2516_v35 }
 0x619   :  { %v2520_v42 = vpop.f32.mrb[132].mxu0  ;;  %2738 = vmatprep.mubr.bf16.mxu1 %v1522_v41 }
 0x61a   :  { %v2521_v44 = vpop.f32.mrb[133].mxu0 }
 0x61b   :  { %v2522_v45 = vadd.f32 %v2521_v44, %v2520_v42  ;;  %v2523_v48 = vpop.f32.mrb[134].mxu0 }
 0x61c   :  { %v2524_v38 = vpop.f32.mrb[135].mxu0 }
 0x61d   :  { %v2525_v49 = vadd.f32 %v2524_v38, %v2523_v48 }
 0x61f   :  { %v1523_v37 = vpack.c.bf16 %v2525_v49, %v2522_v45 }
 0x621   :  { %2739 = vmatmul.mubr.bf16.gmra.mrb[112].mxu1 %v1523_v37  ;;  %v2526_v51 = vpop.f32.mrb[136].mxu0 }
 0x622   :  { %v2527_v52 = vpop.f32.mrb[137].mxu0 }
 0x623   :  { %v2528_v53 = vadd.f32 %v2527_v52, %v2526_v51  ;;  %v2529_v54 = vpop.f32.mrb[138].mxu0 }
 0x624   :  { %v2530_v1 = vpop.f32.mrb[139].mxu0 }
 0x625   :  { %v2531_v7 = vadd.f32 %v2530_v1, %v2529_v54 }
 0x627   :  { %v1524_v9 = vpack.c.bf16 %v2531_v7, %v2528_v53 }
 0x629   :  { %v2532_v10 = vpop.f32.mrb[140].mxu0  ;;  %2742 = vmatprep.mubr.bf16.mxu1 %v1524_v9 }
 0x62a   :  { %v2533_v12 = vpop.f32.mrb[141].mxu0 }
 0x62b   :  { %v2534_v13 = vadd.f32 %v2533_v12, %v2532_v10  ;;  %v2535_v14 = vpop.f32.mrb[142].mxu0 }
 0x62c   :  { %v2536_v0 = vpop.f32.mrb[143].mxu0 }
 0x62d   :  { %v2537_v15 = vadd.f32 %v2536_v0, %v2535_v14 }
 0x62f   :  { %v1525_v55 = vpack.c.bf16 %v2537_v15, %v2534_v13 }
 0x631   :  { %2743 = vmatmul.mubr.bf16.gmra.mrb[116].mxu1 %v1525_v55  ;;  %v2538_v16 = vpop.f32.mrb[144].mxu0 }
 0x632   :  { %v2539_v21 = vpop.f32.mrb[145].mxu0 }
 0x633   :  { %v2540_v61 = vadd.f32 %v2539_v21, %v2538_v16  ;;  %v2541_v11 = vpop.f32.mrb[146].mxu0 }
 0x634   :  { %v2542_v25 = vpop.f32.mrb[147].mxu0 }
 0x635   :  { %v2543_v2 = vadd.f32 %v2542_v25, %v2541_v11 }
 0x637   :  { %v1526_v47 = vpack.c.bf16 %v2543_v2, %v2540_v61 }
 0x639   :  { %v2544_v56 = vpop.f32.mrb[148].mxu0  ;;  %2746 = vmatprep.mubr.bf16.mxu1 %v1526_v47 }
 0x63a   :  { %v2545_v57 = vpop.f32.mrb[149].mxu0 }
 0x63b   :  { %v2546_v58 = vadd.f32 %v2545_v57, %v2544_v56  ;;  %v2547_v59 = vpop.f32.mrb[150].mxu0 }
 0x63c   :  { %v2548_v60 = vpop.f32.mrb[151].mxu0 }
 0x63d   :  { %v2549_v62 = vadd.f32 %v2548_v60, %v2547_v59 }
 0x63f   :  { %v1527_v63 = vpack.c.bf16 %v2549_v62, %v2546_v58 }
 0x641   :  { %2747 = vmatmul.mubr.bf16.gmra.mrb[120].mxu1 %v1527_v63  ;;  %v2550_v4 = vpop.f32.mrb[152].mxu0 }
 0x642   :  { %v2551_v5 = vpop.f32.mrb[153].mxu0 }
 0x643   :  { %v2552_v23 = vadd.f32 %v2551_v5, %v2550_v4  ;;  %v2553_v6 = vpop.f32.mrb[154].mxu0 }
 0x644   :  { %v2554_v22 = vpop.f32.mrb[155].mxu0 }
 0x645   :  { %v2555_v46 = vadd.f32 %v2554_v22, %v2553_v6 }
 0x647   :  { %v1528_v43 = vpack.c.bf16 %v2555_v46, %v2552_v23 }
 0x649   :  { %v2556_v8 = vpop.f32.mrb[156].mxu0  ;;  %2750 = vmatprep.mubr.bf16.mxu1 %v1528_v43 }
 0x64a   :  { %v2557_v17 = vpop.f32.mrb[157].mxu0 }
 0x64b   :  { %v2558_v18 = vadd.f32 %v2557_v17, %v2556_v8  ;;  %v2559_v24 = vpop.f32.mrb[158].mxu0 }
 0x64c   :  { %v2560_v26 = vpop.f32.mrb[159].mxu0 }
 0x64d   :  { %v2561_v27 = vadd.f32 %v2560_v26, %v2559_v24 }
 0x64f   :  { %v1529_v28 = vpack.c.bf16 %v2561_v27, %v2558_v18 }
 0x651   :  { %2751 = vmatmul.mubr.bf16.gmra.mrb[124].mxu1 %v1529_v28 }
 0x6b4   :  { %v2724_v30 = vpop.f32.mrb[96].mxu1 }
 0x6b5   :  { %v1644_v31 = vadd.f32 %v2724_v30, %v3496_v29  ;;  %v1635_v32 = vpop.f32.mrb[97].mxu1 }
 0x6b6   :  { %v1636_v20 = vadd.f32 %v3496_v29, %v1635_v32  ;;  %v2725_v19 = vpop.f32.mrb[98].mxu1 }
 0x6b7   :  { %v1647_v33 = vadd.f32 %v2725_v19, %v3496_v29  ;;  %v1638_v34 = vpop.f32.mrb[99].mxu1  ;;  %v1764_v36 = vmax.f32 %v1644_v31, 0.0 }
 0x6b8   :  { %v1639_v35 = vadd.f32 %v3496_v29, %v1638_v34  ;;  %v1762_v40 = vmax.f32 %v1636_v20, 0.0 }
 0x6b9   :  { %v1765_v39 = vmax.f32 %v1647_v33, 0.0 }
 0x6ba   :  { %v1763_v41 = vmax.f32 %v1639_v35, 0.0 }
 0x6bb   :  { %v1795_v42 = vpack.c.bf16 %v1765_v39, %v1764_v36 }
 0x6bc   :  { %v1794_v44 = vpack.c.bf16 %v1763_v41, %v1762_v40 }
 0x6be   :  { %2770 = vmatprep.mubr.bf16.mxu1 %v1794_v44 }
 0x6bf   :  { %2771 = vmatmul.mubr.bf16.vlgmr.msra.gmra.mrb[128].mxu1 %v1795_v42 }
 0x6c4   :  { %v2728_v45 = vpop.f32.mrb[100].mxu1 }
 0x6c5   :  { %v1660_v48 = vadd.f32 %v2728_v45, %v3496_v29  ;;  %v1651_v38 = vpop.f32.mrb[101].mxu1 }
 0x6c6   :  { %v1652_v49 = vadd.f32 %v3496_v29, %v1651_v38  ;;  %v2729_v37 = vpop.f32.mrb[102].mxu1 }
 0x6c7   :  { %v1663_v51 = vadd.f32 %v2729_v37, %v3496_v29  ;;  %v1654_v52 = vpop.f32.mrb[103].mxu1  ;;  %v1768_v54 = vmax.f32 %v1660_v48, 0.0 }
 0x6c8   :  { %v1655_v53 = vadd.f32 %v3496_v29, %v1654_v52  ;;  %v1766_v7 = vmax.f32 %v1652_v49, 0.0 }
 0x6c9   :  { %v1769_v1 = vmax.f32 %v1663_v51, 0.0 }
 0x6ca   :  { %v1767_v9 = vmax.f32 %v1655_v53, 0.0 }
 0x6cb   :  { %v1797_v10 = vpack.c.bf16 %v1769_v1, %v1768_v54 }
 0x6cc   :  { %v1796_v12 = vpack.c.bf16 %v1767_v9, %v1766_v7 }
 0x6ce   :  { %2774 = vmatprep.mubr.bf16.mxu1 %v1796_v12 }
 0x6cf   :  { %2775 = vmatmul.mubr.bf16.gmra.mrb[132].mxu1 %v1797_v10 }
 0x6d4   :  { %v2732_v13 = vpop.f32.mrb[104].mxu1 }
 0x6d5   :  { %v1676_v14 = vadd.f32 %v2732_v13, %v3496_v29  ;;  %v1667_v0 = vpop.f32.mrb[105].mxu1 }
 0x6d6   :  { %v1668_v15 = vadd.f32 %v3496_v29, %v1667_v0  ;;  %v2733_v55 = vpop.f32.mrb[106].mxu1 }
 0x6d7   :  { %v1679_v16 = vadd.f32 %v2733_v55, %v3496_v29  ;;  %v1670_v21 = vpop.f32.mrb[107].mxu1  ;;  %v1772_v11 = vmax.f32 %v1676_v14, 0.0 }
 0x6d8   :  { %v1671_v61 = vadd.f32 %v3496_v29, %v1670_v21  ;;  %v1770_v2 = vmax.f32 %v1668_v15, 0.0 }
 0x6d9   :  { %v1773_v25 = vmax.f32 %v1679_v16, 0.0 }
 0x6da   :  { %v1771_v50 = vmax.f32 %v1671_v61, 0.0 }
 0x6db   :  { %v1799_v47 = vpack.c.bf16 %v1773_v25, %v1772_v11 }
 0x6dc   :  { %v1798_v56 = vpack.c.bf16 %v1771_v50, %v1770_v2 }
 0x6de   :  { %2778 = vmatprep.mubr.bf16.mxu1 %v1798_v56 }
 0x6df   :  { %2779 = vmatmul.mubr.bf16.gmra.mrb[136].mxu1 %v1799_v47 }
 0x6e4   :  { %v2736_v3 = vpop.f32.mrb[108].mxu1 }
 0x6e5   :  { %v1692_v57 = vadd.f32 %v2736_v3, %v3496_v29  ;;  %v1683_v58 = vpop.f32.mrb[109].mxu1 }
 0x6e6   :  { %v1684_v59 = vadd.f32 %v3496_v29, %v1683_v58  ;;  %v2737_v60 = vpop.f32.mrb[110].mxu1 }
 0x6e7   :  { %v1695_v62 = vadd.f32 %v2737_v60, %v3496_v29  ;;  %v1686_v63 = vpop.f32.mrb[111].mxu1  ;;  %v1776_v5 = vmax.f32 %v1692_v57, 0.0 }
 0x6e8   :  { %v1687_v4 = vadd.f32 %v3496_v29, %v1686_v63  ;;  %v1774_v6 = vmax.f32 %v1684_v59, 0.0 }
 0x6e9   :  { %v1777_v23 = vmax.f32 %v1695_v62, 0.0 }
 0x6ea   :  { %v1775_v22 = vmax.f32 %v1687_v4, 0.0  ;;  %v3533_v4 = vld [vmem:[%s3591_s9] ss:$0 sm:$0xff]  ;;  %s3115_s9 = smov [#allocation13]  }
 0x6eb   :  { %v1801_v46 = vpack.c.bf16 %v1777_v23, %v1776_v5  ;;  %s2079_s12 = sshll.u32 %s3115_s9, 4  ;;  %s2080_s12 = int_to_ptr.vmem [resolvable:$true] %s2079_s12 }
 0x6ec   :  { %v1800_v43 = vpack.c.bf16 %v1775_v22, %v1774_v6  ;;  %s3073_s13 = scalar_lea.vmem %s2080_s12, 4096  ;;  %p3078_p7 = scmp.lt.s32.totalorder %s2080_s12, %s2080_s12 }
 0x6ed   :  { %p3074_p6 = scmp.ne.s32.totalorder %s2080_s12, %s3073_s13  ;;  %p3079_p8 = scmp.lt.s32.totalorder %s3073_s13, %s3073_s13 }
 0x6ee   :  { %2782 = vmatprep.mubr.bf16.mxu1 %v1800_v43 }
 0x6ef   :  { %2783 = vmatmul.mubr.bf16.gmra.mrb[140].mxu1 %v1801_v46  ;;  %p3080_p9 = por %p3079_p8, %p3078_p7 }
 0x6f1   :  { %p3081_p10 = pnand %p3080_p9, %p3074_p6 }
 0x6f4   :  { %v2740_v8 = vpop.f32.mrb[112].mxu1 }
 0x6f5   :  { %v1708_v17 = vadd.f32 %v2740_v8, %v3496_v29  ;;  %v1699_v18 = vpop.f32.mrb[113].mxu1 }
 0x6f6   :  { %v1700_v24 = vadd.f32 %v3496_v29, %v1699_v18  ;;  %v2741_v26 = vpop.f32.mrb[114].mxu1 }
 0x6f7   :  { %v1711_v27 = vadd.f32 %v2741_v26, %v3496_v29  ;;  %v1702_v28 = vpop.f32.mrb[115].mxu1  ;;  %v1780_v31 = vmax.f32 %v1708_v17, 0.0 }
 0x6f8   :  { %v1703_v30 = vadd.f32 %v3496_v29, %v1702_v28  ;;  %v1778_v20 = vmax.f32 %v1700_v24, 0.0 }
 0x6f9   :  { %v1781_v32 = vmax.f32 %v1711_v27, 0.0 }
 0x6fa   :  { %v1779_v19 = vmax.f32 %v1703_v30, 0.0 }
 0x6fb   :  { %v1803_v33 = vpack.c.bf16 %v1781_v32, %v1780_v31 }
 0x6fc   :  { %v1802_v34 = vpack.c.bf16 %v1779_v19, %v1778_v20 }
 0x6fe   :  { %2786 = vmatprep.mubr.bf16.mxu1 %v1802_v34 }
 0x6ff   :  { %2787 = vmatmul.mubr.bf16.gmra.mrb[144].mxu1 %v1803_v33 }
 0x704   :  { %v2744_v35 = vpop.f32.mrb[116].mxu1 }
 0x705   :  { %v1724_v36 = vadd.f32 %v2744_v35, %v3496_v29  ;;  %v1715_v39 = vpop.f32.mrb[117].mxu1 }
 0x706   :  { %v1716_v40 = vadd.f32 %v3496_v29, %v1715_v39  ;;  %v2745_v41 = vpop.f32.mrb[118].mxu1 }
 0x707   :  { %v1727_v42 = vadd.f32 %v2745_v41, %v3496_v29  ;;  %v1718_v44 = vpop.f32.mrb[119].mxu1  ;;  %v1784_v48 = vmax.f32 %v1724_v36, 0.0 }
 0x708   :  { %v1719_v45 = vadd.f32 %v3496_v29, %v1718_v44  ;;  %v1782_v49 = vmax.f32 %v1716_v40, 0.0 }
 0x709   :  { %v1785_v38 = vmax.f32 %v1727_v42, 0.0 }
 0x70a   :  { %v1783_v37 = vmax.f32 %v1719_v45, 0.0 }
 0x70b   :  { %v1805_v51 = vpack.c.bf16 %v1785_v38, %v1784_v48 }
 0x70c   :  { %v1804_v52 = vpack.c.bf16 %v1783_v37, %v1782_v49 }
 0x70e   :  { %2790 = vmatprep.mubr.bf16.mxu1 %v1804_v52 }
 0x70f   :  { %2791 = vmatmul.mubr.bf16.gmra.mrb[148].mxu1 %v1805_v51 }
 0x714   :  { %v2748_v53 = vpop.f32.mrb[120].mxu1 }
 0x715   :  { %v1740_v54 = vadd.f32 %v2748_v53, %v3496_v29  ;;  %v1731_v1 = vpop.f32.mrb[121].mxu1 }
 0x716   :  { %v1732_v7 = vadd.f32 %v3496_v29, %v1731_v1  ;;  %v2749_v9 = vpop.f32.mrb[122].mxu1 }
 0x717   :  { %v1743_v10 = vadd.f32 %v2749_v9, %v3496_v29  ;;  %v1734_v12 = vpop.f32.mrb[123].mxu1  ;;  %v1788_v14 = vmax.f32 %v1740_v54, 0.0 }
 0x718   :  { %v1735_v13 = vadd.f32 %v3496_v29, %v1734_v12  ;;  %v1786_v15 = vmax.f32 %v1732_v7, 0.0 }
 0x719   :  { %v1789_v0 = vmax.f32 %v1743_v10, 0.0 }
 0x71a   :  { %v1787_v55 = vmax.f32 %v1735_v13, 0.0 }
 0x71b   :  { %v1807_v16 = vpack.c.bf16 %v1789_v0, %v1788_v14 }
 0x71c   :  { %v1806_v21 = vpack.c.bf16 %v1787_v55, %v1786_v15 }
 0x71e   :  { %2794 = vmatprep.mubr.bf16.mxu1 %v1806_v21 }
 0x71f   :  { %2795 = vmatmul.mubr.bf16.gmra.mrb[152].mxu1 %v1807_v16 }
 0x724   :  { %v2752_v61 = vpop.f32.mrb[124].mxu1 }
 0x725   :  { %v1756_v11 = vadd.f32 %v2752_v61, %v3496_v29  ;;  %v1747_v25 = vpop.f32.mrb[125].mxu1 }
 0x726   :  { %v1748_v2 = vadd.f32 %v3496_v29, %v1747_v25  ;;  %v2753_v50 = vpop.f32.mrb[126].mxu1 }
 0x727   :  { %v1759_v47 = vadd.f32 %v2753_v50, %v3496_v29  ;;  %v1750_v56 = vpop.f32.mrb[127].mxu1  ;;  %v1792_v57 = vmax.f32 %v1756_v11, 0.0 }
 0x728   :  { %v1751_v3 = vadd.f32 %v3496_v29, %v1750_v56  ;;  %v1790_v59 = vmax.f32 %v1748_v2, 0.0 }
 0x729   :  { %v1793_v58 = vmax.f32 %v1759_v47, 0.0 }
 0x72a   :  { %v1791_v60 = vmax.f32 %v1751_v3, 0.0 }
 0x72b   :  { %v1809_v62 = vpack.c.bf16 %v1793_v58, %v1792_v57 }
 0x72c   :  { %v1808_v63 = vpack.c.bf16 %v1791_v60, %v1790_v59 }
 0x72e   :  { %2798 = vmatprep.mubr.bf16.mxu1 %v1808_v63 }
 0x72f   :  { %2799 = vmatmul.mubr.bf16.gmra.mrb[156].mxu1 %v1809_v62 }
 0x792   :  { %v2772_v5 = vpop.f32.mrb[128].mxu1 }
 0x793   :  { %v1924_v23 = vadd.f32 %v2772_v5, %v3533_v4  ;;  %v1915_v6 = vpop.f32.mrb[129].mxu1 }
 0x794   :  { %v1916_v22 = vadd.f32 %v3533_v4, %v1915_v6  ;;  %v2773_v29 = vpop.f32.mrb[130].mxu1 }
 0x795   :  { %2044 = vst [vmem:[#allocation13 + $0x10] sm:$0xff] %v1924_v23  ;;  %v1927_v46 = vadd.f32 %v2773_v29, %v3533_v4  ;;  %v1918_v43 = vpop.f32.mrb[131].mxu1 }
 0x796   :  { %2042 = vst [vmem:[#allocation13] sm:$0xff] %v1916_v22  ;;  %v1919_v8 = vadd.f32 %v3533_v4, %v1918_v43 }
 0x797   :  { %2045 = vst [vmem:[#allocation13 + $0x18] sm:$0xff] %v1927_v46 }
 0x798   :  { %2043 = vst [vmem:[#allocation13 + $0x8] sm:$0xff] %v1919_v8 }
 0x7a2   :  { %v2776_v17 = vpop.f32.mrb[132].mxu1 }
 0x7a3   :  { %v1940_v18 = vadd.f32 %v2776_v17, %v3533_v4  ;;  %v1931_v24 = vpop.f32.mrb[133].mxu1 }
 0x7a4   :  { %v1932_v26 = vadd.f32 %v3533_v4, %v1931_v24  ;;  %v2777_v27 = vpop.f32.mrb[134].mxu1 }
 0x7a5   :  { %2048 = vst [vmem:[#allocation13 + $0x30] sm:$0xff] %v1940_v18  ;;  %v1943_v28 = vadd.f32 %v2777_v27, %v3533_v4  ;;  %v1934_v30 = vpop.f32.mrb[135].mxu1 }
 0x7a6   :  { %2046 = vst [vmem:[#allocation13 + $0x20] sm:$0xff] %v1932_v26  ;;  %v1935_v31 = vadd.f32 %v3533_v4, %v1934_v30 }
 0x7a7   :  { %2049 = vst [vmem:[#allocation13 + $0x38] sm:$0xff] %v1943_v28 }
 0x7a8   :  { %2047 = vst [vmem:[#allocation13 + $0x28] sm:$0xff] %v1935_v31 }
 0x7b2   :  { %v2780_v32 = vpop.f32.mrb[136].mxu1 }
 0x7b3   :  { %v1956_v20 = vadd.f32 %v2780_v32, %v3533_v4  ;;  %v1947_v19 = vpop.f32.mrb[137].mxu1 }
 0x7b4   :  { %v1948_v33 = vadd.f32 %v3533_v4, %v1947_v19  ;;  %v2781_v34 = vpop.f32.mrb[138].mxu1 }
 0x7b5   :  { %2052 = vst [vmem:[#allocation13 + $0x50] sm:$0xff] %v1956_v20  ;;  %v1959_v35 = vadd.f32 %v2781_v34, %v3533_v4  ;;  %v1950_v36 = vpop.f32.mrb[139].mxu1 }
 0x7b6   :  { %2050 = vst [vmem:[#allocation13 + $0x40] sm:$0xff] %v1948_v33  ;;  %v1951_v39 = vadd.f32 %v3533_v4, %v1950_v36 }
 0x7b7   :  { %2053 = vst [vmem:[#allocation13 + $0x58] sm:$0xff] %v1959_v35 }
 0x7b8   :  { %2051 = vst [vmem:[#allocation13 + $0x48] sm:$0xff] %v1951_v39 }
 0x7c2   :  { %v2784_v40 = vpop.f32.mrb[140].mxu1 }
 0x7c3   :  { %v1972_v41 = vadd.f32 %v2784_v40, %v3533_v4  ;;  %v1963_v42 = vpop.f32.mrb[141].mxu1 }
 0x7c4   :  { %v1964_v44 = vadd.f32 %v3533_v4, %v1963_v42  ;;  %v2785_v45 = vpop.f32.mrb[142].mxu1 }
 0x7c5   :  { %2056 = vst [vmem:[#allocation13 + $0x70] sm:$0xff] %v1972_v41  ;;  %v1975_v48 = vadd.f32 %v2785_v45, %v3533_v4  ;;  %v1966_v38 = vpop.f32.mrb[143].mxu1 }
 0x7c6   :  { %2054 = vst [vmem:[#allocation13 + $0x60] sm:$0xff] %v1964_v44  ;;  %v1967_v49 = vadd.f32 %v3533_v4, %v1966_v38 }
 0x7c7   :  { %2057 = vst [vmem:[#allocation13 + $0x78] sm:$0xff] %v1975_v48 }
 0x7c8   :  { %2055 = vst [vmem:[#allocation13 + $0x68] sm:$0xff] %v1967_v49 }
 0x7d2   :  { %v2788_v37 = vpop.f32.mrb[144].mxu1 }
 0x7d3   :  { %v1988_v51 = vadd.f32 %v2788_v37, %v3533_v4  ;;  %v1979_v52 = vpop.f32.mrb[145].mxu1 }
 0x7d4   :  { %v1980_v53 = vadd.f32 %v3533_v4, %v1979_v52  ;;  %v2789_v54 = vpop.f32.mrb[146].mxu1 }
 0x7d5   :  { %2060 = vst [vmem:[#allocation13 + $0x90] sm:$0xff] %v1988_v51  ;;  %v1991_v1 = vadd.f32 %v2789_v54, %v3533_v4  ;;  %v1982_v7 = vpop.f32.mrb[147].mxu1 }
 0x7d6   :  { %2058 = vst [vmem:[#allocation13 + $0x80] sm:$0xff] %v1980_v53  ;;  %v1983_v9 = vadd.f32 %v3533_v4, %v1982_v7 }
 0x7d7   :  { %2061 = vst [vmem:[#allocation13 + $0x98] sm:$0xff] %v1991_v1 }
 0x7d8   :  { %2059 = vst [vmem:[#allocation13 + $0x88] sm:$0xff] %v1983_v9 }
 0x7e2   :  { %v2792_v10 = vpop.f32.mrb[148].mxu1 }
 0x7e3   :  { %v2004_v12 = vadd.f32 %v2792_v10, %v3533_v4  ;;  %v1995_v13 = vpop.f32.mrb[149].mxu1 }
 0x7e4   :  { %v1996_v14 = vadd.f32 %v3533_v4, %v1995_v13  ;;  %v2793_v0 = vpop.f32.mrb[150].mxu1 }
 0x7e5   :  { %2064 = vst [vmem:[#allocation13 + $0xb0] sm:$0xff] %v2004_v12  ;;  %v2007_v15 = vadd.f32 %v2793_v0, %v3533_v4  ;;  %v1998_v55 = vpop.f32.mrb[151].mxu1 }
 0x7e6   :  { %2062 = vst [vmem:[#allocation13 + $0xa0] sm:$0xff] %v1996_v14  ;;  %v1999_v16 = vadd.f32 %v3533_v4, %v1998_v55 }
 0x7e7   :  { %2065 = vst [vmem:[#allocation13 + $0xb8] sm:$0xff] %v2007_v15 }
 0x7e8   :  { %2063 = vst [vmem:[#allocation13 + $0xa8] sm:$0xff] %v1999_v16 }
 0x7f2   :  { %v2796_v21 = vpop.f32.mrb[152].mxu1 }
 0x7f3   :  { %v2020_v61 = vadd.f32 %v2796_v21, %v3533_v4  ;;  %v2011_v11 = vpop.f32.mrb[153].mxu1 }
 0x7f4   :  { %v2012_v25 = vadd.f32 %v3533_v4, %v2011_v11  ;;  %v2797_v2 = vpop.f32.mrb[154].mxu1 }
 0x7f5   :  { %2068 = vst [vmem:[#allocation13 + $0xd0] sm:$0xff] %v2020_v61  ;;  %v2023_v50 = vadd.f32 %v2797_v2, %v3533_v4  ;;  %v2014_v47 = vpop.f32.mrb[155].mxu1 }
 0x7f6   :  { %2066 = vst [vmem:[#allocation13 + $0xc0] sm:$0xff] %v2012_v25  ;;  %v2015_v56 = vadd.f32 %v3533_v4, %v2014_v47 }
 0x7f7   :  { %2069 = vst [vmem:[#allocation13 + $0xd8] sm:$0xff] %v2023_v50 }
 0x7f8   :  { %2067 = vst [vmem:[#allocation13 + $0xc8] sm:$0xff] %v2015_v56 }
 0x802   :  { %v2800_v3 = vpop.f32.mrb[156].mxu1 }
 0x803   :  { %v2036_v57 = vadd.f32 %v2800_v3, %v3533_v4  ;;  %v2027_v58 = vpop.f32.mrb[157].mxu1 }
 0x804   :  { %v2028_v59 = vadd.f32 %v3533_v4, %v2027_v58  ;;  %v2801_v60 = vpop.f32.mrb[158].mxu1 }
 0x805   :  { %2072 = vst [vmem:[#allocation13 + $0xf0] sm:$0xff] %v2036_v57  ;;  %v2039_v62 = vadd.f32 %v2801_v60, %v3533_v4  ;;  %v2030_v63 = vpop.f32.mrb[159].mxu1 }
 0x806   :  { %2070 = vst [vmem:[#allocation13 + $0xe0] sm:$0xff] %v2028_v59  ;;  %v2031_v5 = vadd.f32 %v3533_v4, %v2030_v63 }
 0x807   :  { %2073 = vst [vmem:[#allocation13 + $0xf8] sm:$0xff] %v2039_v62 }
 0x808   :  { %2071 = vst [vmem:[#allocation13 + $0xe8] sm:$0xff] %v2031_v5 }
 0x809   :  { %3084 = shalt.err (!%p3081_p10)
}
 0x80a   :  { %s3085_s1 = scalar_lea.hbm %s3592_s10, 4096 }
 0x80b   :  { %p3086_p11 = scmp.ne.s32.totalorder %s3592_s10, %s3085_s1  ;;  %p3089_p12 = scmp.lt.u32.totalorder %s3085_s1, %s3592_s10 }
 0x80d   :  { %p3091_p13 = pnand %p3089_p12, %p3086_p11 }
 0x80f   :  { %3094 = shalt.err (!%p3091_p13)
}
 0x810   :  { %2085 = dma.vmem_to_hbm [thread:$0]  %s2080_s12, 4096, %s3592_s10, [#allocation4], %s3110_s4, %s3110_s4, %s3111_s28  }
 0x811   :  { %3103 = dma.done.wait [#allocation4], 4096  }
 0x812   :  { %3104 = vsyncadd [#allocation4], 4294963200 }
 0x813   :  { %2089 = vsyncpa [#allocation3], 1 }
 0x814   :  { %2090 = vsyncpa [#allocation6], 1 }
 0x815   :  { %2091 = vsyncpa [#allocation9], 1 }
 0x816   :  { %2092 = vsyncpa [#allocation12], 1 }
 0x817   :  { %2093 = vsyncpa [#allocation4], 1 }

</bundles_post_ra>
